<compile_context>
chip_gen: v7x
topology: tpu7x:2x2x1
jax: 0.10.0
libtpu: 0.0.40
codegen_flags: <defaults>
</compile_context>

<pallas_src>
import functools
import numpy as np
import jax
import jax.numpy as jnp
from jax import lax
from jax.experimental import pallas as pl
from jax.experimental.pallas import tpu as pltpu


# ----------------------------------------------------------------------------
# Generation-aware defaults
# ----------------------------------------------------------------------------
def _device_kind():
    try:
        return jax.devices()[0].device_kind.lower()
    except Exception:
        return ""


def _is_v7():
    return "v7" in _device_kind()


def _default_batch_chunks(batch):
    # 2 chunks only when the chip has two TensorCores (v7x).  On single-TC
    # v5e/v6e a second chunk would just re-stream every block's weights from HBM.
    return 2 if (_is_v7() and batch % 2 == 0) else 1


def _default_vmem_limit_bytes():
    # v5e/v6e: 128 MiB physical VMEM -> allow a 64 MiB scoped budget.
    # v7x: 64 MiB physical -> stay well below (~40 MiB).
    return (40 if _is_v7() else 64) * 1024 * 1024


# ----------------------------------------------------------------------------
# Kernel
# ----------------------------------------------------------------------------
def _layernorm(y, gamma, beta, eps=1e-5):
    mu = jnp.mean(y, axis=-1, keepdims=True)
    var = jnp.mean((y - mu) ** 2, axis=-1, keepdims=True)
    return (y - mu) * lax.rsqrt(var + eps) * gamma + beta


def encoder_kernel(
    x_ref,                                   # (rows, D) f32  (already emb + pos-enc)
    wqkv_ref, bqkv_ref,                      # (1, D, 3D) bf16 / (1, 1, 3D) f32
    wo_ref, bo_ref,                          # (1, D, D) bf16 / (1, 1, D) f32
    g1_ref, be1_ref,                         # (1, 1, D) f32
    w1_ref, bf1_ref,                         # (1, D, F) bf16 / (1, 1, F) f32
    w2_ref, bf2_ref,                         # (1, F, D) bf16 / (1, 1, D) f32
    g2_ref, be2_ref,                         # (1, 1, D) f32
    o_ref,                                   # (rows, D) f32 — VMEM-resident activation carry
    ctx_ref,                                 # VMEM scratch (rows, D) bf16 — per-head ctx slab
    *, num_heads, batch_per_chunk, seq_len,
):
    blk = pl.program_id(1)

    # o_ref's block index is constant across the block axis, so it stays resident
    # in VMEM: seed it with the pos-encoded embeddings once, then read/modify/write
    # it every block.  Writeback to HBM happens only when the chunk finishes.
    @pl.when(blk == 0)
    def _():
        o_ref[...] = x_ref[...]

    x = o_ref[...]                                     # (rows, D) f32
    n_rows, D = x.shape
    Dh = D // num_heads
    scale = float(1.0 / np.sqrt(Dh))

    x_bf = x.astype(jnp.bfloat16)

    # ---- fused QKV projection:  (rows, D) @ (D, 3D)  --------------------------
    qkv = jnp.dot(x_bf, wqkv_ref[0],
                  preferred_element_type=jnp.float32) + bqkv_ref[0]     # (rows, 3D) f32
    # (rows, D) -> (bpc, S, D): sublane-only split, layout-free.
    q = qkv[:, :D].astype(jnp.bfloat16).reshape(batch_per_chunk, seq_len, D)
    k = qkv[:, D:2 * D].astype(jnp.bfloat16).reshape(batch_per_chunk, seq_len, D)
    v = qkv[:, 2 * D:].astype(jnp.bfloat16).reshape(batch_per_chunk, seq_len, D)

    # ---- multi-head self-attention --------------------------------------------
    # Sequences are batched through the single dot_general batch dim; heads stay a
    # short static loop (Mosaic allows only one batch dim, and moving heads to a
    # batch dim would need a lane->sublane relayout).  Each head's context is
    # stored into its lane slice of ctx_ref, then ONE full-width (rows,D)@(D,D)
    # matmul applies the output projection.
    # TODO(synk): at production num_heads / batch_per_chunk, convert this to a
    # lax.fori_loop with pl.ds lane offsets to bound live ranges.
    for h in range(num_heads):
        csl = slice(h * Dh, (h + 1) * Dh)
        qh, kh, vh = q[:, :, csl], k[:, :, csl], v[:, :, csl]          # (bpc, S, Dh)
        s = jnp.einsum('bqd,bkd->bqk', qh, kh,
                       preferred_element_type=jnp.float32) * scale      # (bpc, S, S) f32
        m = jnp.max(s, axis=-1, keepdims=True)
        e = jnp.exp(s - m)
        # approx=False: exact reciprocal to stay close to the f32 softmax reference.
        p = e * pl.reciprocal(jnp.sum(e, axis=-1, keepdims=True), approx=False)
        ctx = jnp.einsum('bqk,bkd->bqd', p.astype(jnp.bfloat16), vh,
                         preferred_element_type=jnp.float32)            # (bpc, S, Dh)
        ctx_ref[:, csl] = ctx.reshape(n_rows, Dh).astype(jnp.bfloat16)

    attn = jnp.dot(ctx_ref[...], wo_ref[0],
                   preferred_element_type=jnp.float32) + bo_ref[0]      # (rows, D) f32

    # ---- add & norm ------------------------------------------------------------
    y1 = _layernorm(x + attn, g1_ref[0], be1_ref[0])

    # ---- feed forward ----------------------------------------------------------
    # TODO(synk): for production-size D (512/1024+) tile the FFN over F with a
    # K-reduction grid axis (+accumulator) so per-block weights + activations fit
    # v7x's 64 MiB VMEM; also grow rows per chunk to >= 256 for MXU utilization.
    h1 = jnp.dot(y1.astype(jnp.bfloat16), w1_ref[0],
                 preferred_element_type=jnp.float32) + bf1_ref[0]
    h1 = jnp.maximum(h1, 0.0).astype(jnp.bfloat16)                      # relu, bf16 right away
    ff = jnp.dot(h1, w2_ref[0],
                 preferred_element_type=jnp.float32) + bf2_ref[0]

    # ---- add & norm ------------------------------------------------------------
    out = _layernorm(y1 + ff, g2_ref[0], be2_ref[0])

    o_ref[...] = out.astype(o_ref.dtype)               # carry to next block / final output


# ----------------------------------------------------------------------------
# Wrapper
# ----------------------------------------------------------------------------
def encoder_forward(tokens, emb_table, pe, params, num_heads, batch_chunks=None):
    B, S = tokens.shape
    D = emb_table.shape[1]
    L = params["wqkv"].shape[0]
    F = params["w1"].shape[2]

    if batch_chunks is None:
        batch_chunks = _default_batch_chunks(B)
    assert B % batch_chunks == 0
    bpc = B // batch_chunks                            # batch elements per grid chunk
    rows = bpc * S

    # Embedding gather + additive PE: the data-dependent gather is left to XLA,
    # which fuses the `+ pe` into it.  Everything downstream is one Pallas kernel.
    emb = jnp.take(emb_table, tokens, axis=0)                          # (B, S, D)
    x = (emb + pe[None, :S, :]).reshape(B * S, D).astype(jnp.float32)  # (B*S, D)

    wspec = lambda s1, s2: pl.BlockSpec((1, s1, s2), lambda c, n: (n, 0, 0))
    # x is only read at blk == 0 and its block index is constant across the inner
    # axis, so its (single) buffer is fetched once per chunk.
    act_spec = pl.BlockSpec((rows, D), lambda c, n: (c, 0))

    kernel = functools.partial(
        encoder_kernel, num_heads=num_heads, batch_per_chunk=bpc, seq_len=S)

    out2d = pl.pallas_call(
        kernel,
        out_shape=jax.ShapeDtypeStruct((B * S, D), jnp.float32),
        grid=(batch_chunks, L),
        in_specs=[
            act_spec,                                  # x
            wspec(D, 3 * D), wspec(1, 3 * D),          # wqkv, bqkv
            wspec(D, D), wspec(1, D),                  # wo, bo
            wspec(1, D), wspec(1, D),                  # ln1 gamma, beta
            wspec(D, F), wspec(1, F),                  # w1, bf1
            wspec(F, D), wspec(1, D),                  # w2, bf2
            wspec(1, D), wspec(1, D),                  # ln2 gamma, beta
        ],
        out_specs=act_spec,
        scratch_shapes=[pltpu.VMEM((rows, D), jnp.bfloat16)],          # per-head ctx slab
        compiler_params=pltpu.CompilerParams(
            dimension_semantics=("parallel", "arbitrary"),
            vmem_limit_bytes=_default_vmem_limit_bytes(),
        ),
    )(
        x,
        params["wqkv"], params["bqkv"], params["wo"], params["bo"],
        params["ln1_g"], params["ln1_b"],
        params["w1"], params["bf1"], params["w2"], params["bf2"],
        params["ln2_g"], params["ln2_b"],
    )
    return out2d.reshape(B, S, D)


def sinusoidal_pos_encoding(max_seq_len, d_model):
    pos = np.arange(max_seq_len)[:, None].astype(np.float32)
    i = np.arange(d_model)[None, :].astype(np.float32)
    angle = pos / np.power(10000.0, (2.0 * (i // 2)) / d_model)
    pe = np.zeros((max_seq_len, d_model), dtype=np.float32)
    pe[:, 0::2] = np.sin(angle[:, 0::2])
    pe[:, 1::2] = np.cos(angle[:, 1::2])
    return jnp.asarray(pe)


def init_params(key, vocab_size, d_model, num_blocks, expansion_factor):
    D, L = d_model, num_blocks
    F = D * expansion_factor
    keys = jax.random.split(key, 1 + L * 6)
    emb_table = 0.02 * jax.random.normal(keys[0], (vocab_size, D), jnp.float32)

    init = lambda kk, shape: 0.02 * jax.random.normal(kk, shape, jnp.float32)
    wq, wk, wv, wo, w1, w2 = [], [], [], [], [], []
    for n in range(L):
        k = keys[1 + n * 6: 1 + (n + 1) * 6]
        wq.append(init(k[0], (D, D)))
        wk.append(init(k[1], (D, D)))
        wv.append(init(k[2], (D, D)))
        wo.append(init(k[3], (D, D)))
        w1.append(init(k[4], (D, F)))
        w2.append(init(k[5], (F, D)))
    stack = lambda xs: jnp.stack(xs, axis=0)
    # Fused QKV weight == concat of the three nn.Linear weights along the output axis.
    wqkv = jnp.concatenate([stack(wq), stack(wk), stack(wv)], axis=-1)   # (L, D, 3D)

    params = dict(
        wqkv=wqkv.astype(jnp.bfloat16),
        bqkv=jnp.zeros((L, 1, 3 * D), jnp.float32),
        wo=stack(wo).astype(jnp.bfloat16),
        bo=jnp.zeros((L, 1, D), jnp.float32),
        ln1_g=jnp.ones((L, 1, D), jnp.float32),
        ln1_b=jnp.zeros((L, 1, D), jnp.float32),
        w1=stack(w1).astype(jnp.bfloat16),
        bf1=jnp.zeros((L, 1, F), jnp.float32),
        w2=stack(w2).astype(jnp.bfloat16),
        bf2=jnp.zeros((L, 1, D), jnp.float32),
        ln2_g=jnp.ones((L, 1, D), jnp.float32),
        ln2_b=jnp.zeros((L, 1, D), jnp.float32),
    )
    return emb_table, params


# ----------------------------------------------------------------------------
if __name__ == "__main__":
    # Small, module-consistent shapes (d_model = 128 so stores are lane-dense).
    vocab_size = 64
    max_seq_len = 16
    batch = 2
    seq_len = 8
    d_model = 128
    num_blocks = 2
    num_heads = 4
    expansion_factor = 4

    key = jax.random.PRNGKey(0)
    k_tok, k_par = jax.random.split(key)
    tokens = jax.random.randint(k_tok, (batch, seq_len), 0, vocab_size, dtype=jnp.int32)

    emb_table, params = init_params(k_par, vocab_size, d_model, num_blocks, expansion_factor)
    pe = sinusoidal_pos_encoding(max_seq_len, d_model)

    fwd = jax.jit(functools.partial(encoder_forward, num_heads=num_heads))
    out = fwd(tokens, emb_table, pe, params)
    out = jax.block_until_ready(out)
    assert out.shape == (batch, seq_len, d_model)
    assert bool(jnp.all(jnp.isfinite(out)))
    print("KERNEL_OK")
</pallas_src>

<mosaic_0001>
module attributes {stable_mosaic.version = 11 : i64} {
  func.func @encoder_kernel(%arg0: i32, %arg1: i32, %arg2: memref<16x128xf32, #tpu.memory_space<vmem>>, %arg3: memref<1x128x384xbf16, #tpu.memory_space<vmem>>, %arg4: memref<1x1x384xf32, #tpu.memory_space<vmem>>, %arg5: memref<1x128x128xbf16, #tpu.memory_space<vmem>>, %arg6: memref<1x1x128xf32, #tpu.memory_space<vmem>>, %arg7: memref<1x1x128xf32, #tpu.memory_space<vmem>>, %arg8: memref<1x1x128xf32, #tpu.memory_space<vmem>>, %arg9: memref<1x128x512xbf16, #tpu.memory_space<vmem>>, %arg10: memref<1x1x512xf32, #tpu.memory_space<vmem>>, %arg11: memref<1x512x128xbf16, #tpu.memory_space<vmem>>, %arg12: memref<1x1x128xf32, #tpu.memory_space<vmem>>, %arg13: memref<1x1x128xf32, #tpu.memory_space<vmem>>, %arg14: memref<1x1x128xf32, #tpu.memory_space<vmem>>, %arg15: memref<16x128xf32, #tpu.memory_space<vmem>>, %arg16: memref<16x128xbf16, #tpu.memory_space<vmem>>) attributes {dimension_semantics = [#tpu.dimension_semantics<parallel>, #tpu.dimension_semantics<arbitrary>], iteration_bounds = array<i64: 1, 2>, scalar_prefetch = 0 : i64, scratch_operands = 1 : i64, tpu.core_type = #tpu.core_type<tc>, window_params = [{transform_indices = @transform_0, window_bounds = array<i64: 16, 128>}, {transform_indices = @transform_1, window_bounds = array<i64: 1, 128, 384>}, {transform_indices = @transform_2, window_bounds = array<i64: 1, 1, 384>}, {transform_indices = @transform_3, window_bounds = array<i64: 1, 128, 128>}, {transform_indices = @transform_4, window_bounds = array<i64: 1, 1, 128>}, {transform_indices = @transform_5, window_bounds = array<i64: 1, 1, 128>}, {transform_indices = @transform_6, window_bounds = array<i64: 1, 1, 128>}, {transform_indices = @transform_7, window_bounds = array<i64: 1, 128, 512>}, {transform_indices = @transform_8, window_bounds = array<i64: 1, 1, 512>}, {transform_indices = @transform_9, window_bounds = array<i64: 1, 512, 128>}, {transform_indices = @transform_10, window_bounds = array<i64: 1, 1, 128>}, {transform_indices = @transform_11, window_bounds = array<i64: 1, 1, 128>}, {transform_indices = @transform_12, window_bounds = array<i64: 1, 1, 128>}, {transform_indices = @transform_13, window_bounds = array<i64: 16, 128>}]} {
    %c0_i32 = arith.constant 0 : i32
    %0 = arith.cmpi eq, %arg1, %c0_i32 : i32
    %1 = arith.extui %0 : i1 to i32
    %c0_i32_0 = arith.constant 0 : i32
    %2 = arith.cmpi ne, %1, %c0_i32_0 : i32
    scf.if %2 {
      %c0_81 = arith.constant 0 : index
      %c0_82 = arith.constant 0 : index
      %186 = vector.load %arg2[%c0_81, %c0_82] : memref<16x128xf32, #tpu.memory_space<vmem>>, vector<16x128xf32>
      %c0_83 = arith.constant 0 : index
      %c0_84 = arith.constant 0 : index
      %187 = vector.load %arg15[%c0_83, %c0_84] : memref<16x128xf32, #tpu.memory_space<vmem>>, vector<16x128xf32>
      tpu.vector_store %arg15[%c0_83, %c0_84], %186 {strides = array<i32>} : memref<16x128xf32, #tpu.memory_space<vmem>>, vector<16x128xf32>,
    } else {
    }
    %c0 = arith.constant 0 : index
    %c0_1 = arith.constant 0 : index
    %3 = vector.load %arg15[%c0, %c0_1] : memref<16x128xf32, #tpu.memory_space<vmem>>, vector<16x128xf32>
    %4 = arith.truncf %3 : vector<16x128xf32> to vector<16x128xbf16>
    %c0_2 = arith.constant 0 : index
    %c0_3 = arith.constant 0 : index
    %c0_4 = arith.constant 0 : index
    %5 = vector.load %arg3[%c0_2, %c0_3, %c0_4] : memref<1x128x384xbf16, #tpu.memory_space<vmem>>, vector<1x128x384xbf16>
    %6 = vector.shape_cast %5 : vector<1x128x384xbf16> to vector<128x384xbf16>
    %cst = arith.constant dense<0.000000e+00> : vector<16x384xf32>
    %7 = tpu.matmul %4, %6, %cst {dimension_numbers = #tpu.dot_dimension_numbers<[1], [0], [0], [1], [0, 0, 1, 1], [], []>} : vector<16x128xbf16>, vector<128x384xbf16>, vector<16x384xf32> -> vector<16x384xf32>
    %c0_5 = arith.constant 0 : index
    %c0_6 = arith.constant 0 : index
    %c0_7 = arith.constant 0 : index
    %8 = vector.load %arg4[%c0_5, %c0_6, %c0_7] : memref<1x1x384xf32, #tpu.memory_space<vmem>>, vector<1x1x384xf32>
    %9 = vector.shape_cast %8 : vector<1x1x384xf32> to vector<1x384xf32>
    %10 = vector.broadcast %9 : vector<1x384xf32> to vector<16x384xf32>
    %11 = arith.addf %7, %10 : vector<16x384xf32>
    %12 = vector.extract_strided_slice %11 {offsets = [0, 0], sizes = [16, 128], strides = [1, 1]} : vector<16x384xf32> to vector<16x128xf32>
    %13 = arith.truncf %12 : vector<16x128xf32> to vector<16x128xbf16>
    %14 = vector.shape_cast %13 : vector<16x128xbf16> to vector<2x8x128xbf16>
    %15 = vector.extract_strided_slice %11 {offsets = [0, 128], sizes = [16, 128], strides = [1, 1]} : vector<16x384xf32> to vector<16x128xf32>
    %16 = arith.truncf %15 : vector<16x128xf32> to vector<16x128xbf16>
    %17 = vector.shape_cast %16 : vector<16x128xbf16> to vector<2x8x128xbf16>
    %18 = vector.extract_strided_slice %11 {offsets = [0, 256], sizes = [16, 128], strides = [1, 1]} : vector<16x384xf32> to vector<16x128xf32>
    %19 = arith.truncf %18 : vector<16x128xf32> to vector<16x128xbf16>
    %20 = vector.shape_cast %19 : vector<16x128xbf16> to vector<2x8x128xbf16>
    %21 = vector.extract_strided_slice %14 {offsets = [0, 0, 0], sizes = [2, 8, 32], strides = [1, 1, 1]} : vector<2x8x128xbf16> to vector<2x8x32xbf16>
    %22 = vector.extract_strided_slice %17 {offsets = [0, 0, 0], sizes = [2, 8, 32], strides = [1, 1, 1]} : vector<2x8x128xbf16> to vector<2x8x32xbf16>
    %23 = vector.extract_strided_slice %20 {offsets = [0, 0, 0], sizes = [2, 8, 32], strides = [1, 1, 1]} : vector<2x8x128xbf16> to vector<2x8x32xbf16>
    "tpu.trace_start"() <{level = 10 : i32, message = "bqd,bkd->bqk"}> : () -> ()
    %cst_8 = arith.constant dense<0.000000e+00> : vector<2x8x8xf32>
    %24 = tpu.matmul %21, %22, %cst_8 {dimension_numbers = #tpu.dot_dimension_numbers<[2], [2], [1], [1], [0, 0, 0, 1, 1, 1], [0], [0]>} : vector<2x8x32xbf16>, vector<2x8x32xbf16>, vector<2x8x8xf32> -> vector<2x8x8xf32>
    "tpu.trace_stop"() : () -> ()
    %cst_9 = arith.constant 0.176776692 : f32
    %25 = vector.broadcast %cst_9 : f32 to vector<2x8x8xf32>
    %26 = arith.mulf %24, %25 : vector<2x8x8xf32>
    %cst_10 = arith.constant dense<0xFF800000> : vector<2x8xf32>
    %27 = vector.multi_reduction <maximumf>, %26, %cst_10 [2] : vector<2x8x8xf32> to vector<2x8xf32>
    %28 = vector.shape_cast %27 : vector<2x8xf32> to vector<2x8x1xf32>
    %29 = vector.broadcast %28 : vector<2x8x1xf32> to vector<2x8x8xf32>
    %30 = arith.subf %26, %29 : vector<2x8x8xf32>
    %31 = math.exp %30 : vector<2x8x8xf32>
    %cst_11 = arith.constant dense<0.000000e+00> : vector<2x8xf32>
    %32 = vector.multi_reduction <add>, %31, %cst_11 [2] : vector<2x8x8xf32> to vector<2x8xf32>
    %33 = vector.shape_cast %32 : vector<2x8xf32> to vector<2x8x1xf32>
    %34 = tpu.reciprocal %33 : vector<2x8x1xf32> -> vector<2x8x1xf32>
    %35 = vector.broadcast %34 : vector<2x8x1xf32> to vector<2x8x8xf32>
    %36 = arith.mulf %31, %35 : vector<2x8x8xf32>
    %37 = arith.truncf %36 : vector<2x8x8xf32> to vector<2x8x8xbf16>
    "tpu.trace_start"() <{level = 10 : i32, message = "bqk,bkd->bqd"}> : () -> ()
    %cst_12 = arith.constant dense<0.000000e+00> : vector<2x8x32xf32>
    %38 = tpu.matmul %37, %23, %cst_12 {dimension_numbers = #tpu.dot_dimension_numbers<[2], [1], [1], [2], [0, 0, 0, 1, 1, 2], [0], [0]>} : vector<2x8x8xbf16>, vector<2x8x32xbf16>, vector<2x8x32xf32> -> vector<2x8x32xf32>
    "tpu.trace_stop"() : () -> ()
    %39 = vector.shape_cast %38 : vector<2x8x32xf32> to vector<16x32xf32>
    %40 = arith.truncf %39 : vector<16x32xf32> to vector<16x32xbf16>
    %c0_13 = arith.constant 0 : index
    %c0_14 = arith.constant 0 : index
    %41 = vector.load %arg16[%c0_13, %c0_14] : memref<16x128xbf16, #tpu.memory_space<vmem>>, vector<16x32xbf16>
    tpu.vector_store %arg16[%c0_13, %c0_14], %40 {strides = array<i32>} : memref<16x128xbf16, #tpu.memory_space<vmem>>, vector<16x32xbf16>,
    %42 = vector.extract_strided_slice %14 {offsets = [0, 0, 32], sizes = [2, 8, 32], strides = [1, 1, 1]} : vector<2x8x128xbf16> to vector<2x8x32xbf16>
    %43 = vector.extract_strided_slice %17 {offsets = [0, 0, 32], sizes = [2, 8, 32], strides = [1, 1, 1]} : vector<2x8x128xbf16> to vector<2x8x32xbf16>
    %44 = vector.extract_strided_slice %20 {offsets = [0, 0, 32], sizes = [2, 8, 32], strides = [1, 1, 1]} : vector<2x8x128xbf16> to vector<2x8x32xbf16>
    "tpu.trace_start"() <{level = 10 : i32, message = "bqd,bkd->bqk"}> : () -> ()
    %cst_15 = arith.constant dense<0.000000e+00> : vector<2x8x8xf32>
    %45 = tpu.matmul %42, %43, %cst_15 {dimension_numbers = #tpu.dot_dimension_numbers<[2], [2], [1], [1], [0, 0, 0, 1, 1, 1], [0], [0]>} : vector<2x8x32xbf16>, vector<2x8x32xbf16>, vector<2x8x8xf32> -> vector<2x8x8xf32>
    "tpu.trace_stop"() : () -> ()
    %cst_16 = arith.constant 0.176776692 : f32
    %46 = vector.broadcast %cst_16 : f32 to vector<2x8x8xf32>
    %47 = arith.mulf %45, %46 : vector<2x8x8xf32>
    %cst_17 = arith.constant dense<0xFF800000> : vector<2x8xf32>
    %48 = vector.multi_reduction <maximumf>, %47, %cst_17 [2] : vector<2x8x8xf32> to vector<2x8xf32>
    %49 = vector.shape_cast %48 : vector<2x8xf32> to vector<2x8x1xf32>
    %50 = vector.broadcast %49 : vector<2x8x1xf32> to vector<2x8x8xf32>
    %51 = arith.subf %47, %50 : vector<2x8x8xf32>
    %52 = math.exp %51 : vector<2x8x8xf32>
    %cst_18 = arith.constant dense<0.000000e+00> : vector<2x8xf32>
    %53 = vector.multi_reduction <add>, %52, %cst_18 [2] : vector<2x8x8xf32> to vector<2x8xf32>
    %54 = vector.shape_cast %53 : vector<2x8xf32> to vector<2x8x1xf32>
    %55 = tpu.reciprocal %54 : vector<2x8x1xf32> -> vector<2x8x1xf32>
    %56 = vector.broadcast %55 : vector<2x8x1xf32> to vector<2x8x8xf32>
    %57 = arith.mulf %52, %56 : vector<2x8x8xf32>
    %58 = arith.truncf %57 : vector<2x8x8xf32> to vector<2x8x8xbf16>
    "tpu.trace_start"() <{level = 10 : i32, message = "bqk,bkd->bqd"}> : () -> ()
    %cst_19 = arith.constant dense<0.000000e+00> : vector<2x8x32xf32>
    %59 = tpu.matmul %58, %44, %cst_19 {dimension_numbers = #tpu.dot_dimension_numbers<[2], [1], [1], [2], [0, 0, 0, 1, 1, 2], [0], [0]>} : vector<2x8x8xbf16>, vector<2x8x32xbf16>, vector<2x8x32xf32> -> vector<2x8x32xf32>
    "tpu.trace_stop"() : () -> ()
    %60 = vector.shape_cast %59 : vector<2x8x32xf32> to vector<16x32xf32>
    %61 = arith.truncf %60 : vector<16x32xf32> to vector<16x32xbf16>
    %c0_20 = arith.constant 0 : index
    %c32 = arith.constant 32 : index
    %62 = vector.load %arg16[%c0_20, %c32] : memref<16x128xbf16, #tpu.memory_space<vmem>>, vector<16x32xbf16>
    tpu.vector_store %arg16[%c0_20, %c32], %61 {strides = array<i32>} : memref<16x128xbf16, #tpu.memory_space<vmem>>, vector<16x32xbf16>,
    %63 = vector.extract_strided_slice %14 {offsets = [0, 0, 64], sizes = [2, 8, 32], strides = [1, 1, 1]} : vector<2x8x128xbf16> to vector<2x8x32xbf16>
    %64 = vector.extract_strided_slice %17 {offsets = [0, 0, 64], sizes = [2, 8, 32], strides = [1, 1, 1]} : vector<2x8x128xbf16> to vector<2x8x32xbf16>
    %65 = vector.extract_strided_slice %20 {offsets = [0, 0, 64], sizes = [2, 8, 32], strides = [1, 1, 1]} : vector<2x8x128xbf16> to vector<2x8x32xbf16>
    "tpu.trace_start"() <{level = 10 : i32, message = "bqd,bkd->bqk"}> : () -> ()
    %cst_21 = arith.constant dense<0.000000e+00> : vector<2x8x8xf32>
    %66 = tpu.matmul %63, %64, %cst_21 {dimension_numbers = #tpu.dot_dimension_numbers<[2], [2], [1], [1], [0, 0, 0, 1, 1, 1], [0], [0]>} : vector<2x8x32xbf16>, vector<2x8x32xbf16>, vector<2x8x8xf32> -> vector<2x8x8xf32>
    "tpu.trace_stop"() : () -> ()
    %cst_22 = arith.constant 0.176776692 : f32
    %67 = vector.broadcast %cst_22 : f32 to vector<2x8x8xf32>
    %68 = arith.mulf %66, %67 : vector<2x8x8xf32>
    %cst_23 = arith.constant dense<0xFF800000> : vector<2x8xf32>
    %69 = vector.multi_reduction <maximumf>, %68, %cst_23 [2] : vector<2x8x8xf32> to vector<2x8xf32>
    %70 = vector.shape_cast %69 : vector<2x8xf32> to vector<2x8x1xf32>
    %71 = vector.broadcast %70 : vector<2x8x1xf32> to vector<2x8x8xf32>
    %72 = arith.subf %68, %71 : vector<2x8x8xf32>
    %73 = math.exp %72 : vector<2x8x8xf32>
    %cst_24 = arith.constant dense<0.000000e+00> : vector<2x8xf32>
    %74 = vector.multi_reduction <add>, %73, %cst_24 [2] : vector<2x8x8xf32> to vector<2x8xf32>
    %75 = vector.shape_cast %74 : vector<2x8xf32> to vector<2x8x1xf32>
    %76 = tpu.reciprocal %75 : vector<2x8x1xf32> -> vector<2x8x1xf32>
    %77 = vector.broadcast %76 : vector<2x8x1xf32> to vector<2x8x8xf32>
    %78 = arith.mulf %73, %77 : vector<2x8x8xf32>
    %79 = arith.truncf %78 : vector<2x8x8xf32> to vector<2x8x8xbf16>
    "tpu.trace_start"() <{level = 10 : i32, message = "bqk,bkd->bqd"}> : () -> ()
    %cst_25 = arith.constant dense<0.000000e+00> : vector<2x8x32xf32>
    %80 = tpu.matmul %79, %65, %cst_25 {dimension_numbers = #tpu.dot_dimension_numbers<[2], [1], [1], [2], [0, 0, 0, 1, 1, 2], [0], [0]>} : vector<2x8x8xbf16>, vector<2x8x32xbf16>, vector<2x8x32xf32> -> vector<2x8x32xf32>
    "tpu.trace_stop"() : () -> ()
    %81 = vector.shape_cast %80 : vector<2x8x32xf32> to vector<16x32xf32>
    %82 = arith.truncf %81 : vector<16x32xf32> to vector<16x32xbf16>
    %c0_26 = arith.constant 0 : index
    %c64 = arith.constant 64 : index
    %83 = vector.load %arg16[%c0_26, %c64] : memref<16x128xbf16, #tpu.memory_space<vmem>>, vector<16x32xbf16>
    tpu.vector_store %arg16[%c0_26, %c64], %82 {strides = array<i32>} : memref<16x128xbf16, #tpu.memory_space<vmem>>, vector<16x32xbf16>,
    %84 = vector.extract_strided_slice %14 {offsets = [0, 0, 96], sizes = [2, 8, 32], strides = [1, 1, 1]} : vector<2x8x128xbf16> to vector<2x8x32xbf16>
    %85 = vector.extract_strided_slice %17 {offsets = [0, 0, 96], sizes = [2, 8, 32], strides = [1, 1, 1]} : vector<2x8x128xbf16> to vector<2x8x32xbf16>
    %86 = vector.extract_strided_slice %20 {offsets = [0, 0, 96], sizes = [2, 8, 32], strides = [1, 1, 1]} : vector<2x8x128xbf16> to vector<2x8x32xbf16>
    "tpu.trace_start"() <{level = 10 : i32, message = "bqd,bkd->bqk"}> : () -> ()
    %cst_27 = arith.constant dense<0.000000e+00> : vector<2x8x8xf32>
    %87 = tpu.matmul %84, %85, %cst_27 {dimension_numbers = #tpu.dot_dimension_numbers<[2], [2], [1], [1], [0, 0, 0, 1, 1, 1], [0], [0]>} : vector<2x8x32xbf16>, vector<2x8x32xbf16>, vector<2x8x8xf32> -> vector<2x8x8xf32>
    "tpu.trace_stop"() : () -> ()
    %cst_28 = arith.constant 0.176776692 : f32
    %88 = vector.broadcast %cst_28 : f32 to vector<2x8x8xf32>
    %89 = arith.mulf %87, %88 : vector<2x8x8xf32>
    %cst_29 = arith.constant dense<0xFF800000> : vector<2x8xf32>
    %90 = vector.multi_reduction <maximumf>, %89, %cst_29 [2] : vector<2x8x8xf32> to vector<2x8xf32>
    %91 = vector.shape_cast %90 : vector<2x8xf32> to vector<2x8x1xf32>
    %92 = vector.broadcast %91 : vector<2x8x1xf32> to vector<2x8x8xf32>
    %93 = arith.subf %89, %92 : vector<2x8x8xf32>
    %94 = math.exp %93 : vector<2x8x8xf32>
    %cst_30 = arith.constant dense<0.000000e+00> : vector<2x8xf32>
    %95 = vector.multi_reduction <add>, %94, %cst_30 [2] : vector<2x8x8xf32> to vector<2x8xf32>
    %96 = vector.shape_cast %95 : vector<2x8xf32> to vector<2x8x1xf32>
    %97 = tpu.reciprocal %96 : vector<2x8x1xf32> -> vector<2x8x1xf32>
    %98 = vector.broadcast %97 : vector<2x8x1xf32> to vector<2x8x8xf32>
    %99 = arith.mulf %94, %98 : vector<2x8x8xf32>
    %100 = arith.truncf %99 : vector<2x8x8xf32> to vector<2x8x8xbf16>
    "tpu.trace_start"() <{level = 10 : i32, message = "bqk,bkd->bqd"}> : () -> ()
    %cst_31 = arith.constant dense<0.000000e+00> : vector<2x8x32xf32>
    %101 = tpu.matmul %100, %86, %cst_31 {dimension_numbers = #tpu.dot_dimension_numbers<[2], [1], [1], [2], [0, 0, 0, 1, 1, 2], [0], [0]>} : vector<2x8x8xbf16>, vector<2x8x32xbf16>, vector<2x8x32xf32> -> vector<2x8x32xf32>
    "tpu.trace_stop"() : () -> ()
    %102 = vector.shape_cast %101 : vector<2x8x32xf32> to vector<16x32xf32>
    %103 = arith.truncf %102 : vector<16x32xf32> to vector<16x32xbf16>
    %c0_32 = arith.constant 0 : index
    %c96 = arith.constant 96 : index
    %104 = vector.load %arg16[%c0_32, %c96] : memref<16x128xbf16, #tpu.memory_space<vmem>>, vector<16x32xbf16>
    tpu.vector_store %arg16[%c0_32, %c96], %103 {strides = array<i32>} : memref<16x128xbf16, #tpu.memory_space<vmem>>, vector<16x32xbf16>,
    %c0_33 = arith.constant 0 : index
    %c0_34 = arith.constant 0 : index
    %105 = vector.load %arg16[%c0_33, %c0_34] : memref<16x128xbf16, #tpu.memory_space<vmem>>, vector<16x128xbf16>
    %c0_35 = arith.constant 0 : index
    %c0_36 = arith.constant 0 : index
    %c0_37 = arith.constant 0 : index
    %106 = vector.load %arg5[%c0_35, %c0_36, %c0_37] : memref<1x128x128xbf16, #tpu.memory_space<vmem>>, vector<1x128x128xbf16>
    %107 = vector.shape_cast %106 : vector<1x128x128xbf16> to vector<128x128xbf16>
    %cst_38 = arith.constant dense<0.000000e+00> : vector<16x128xf32>
    %108 = tpu.matmul %105, %107, %cst_38 {dimension_numbers = #tpu.dot_dimension_numbers<[1], [0], [0], [1], [0, 0, 1, 1], [], []>} : vector<16x128xbf16>, vector<128x128xbf16>, vector<16x128xf32> -> vector<16x128xf32>
    %c0_39 = arith.constant 0 : index
    %c0_40 = arith.constant 0 : index
    %c0_41 = arith.constant 0 : index
    %109 = vector.load %arg6[%c0_39, %c0_40, %c0_41] : memref<1x1x128xf32, #tpu.memory_space<vmem>>, vector<1x1x128xf32>
    %110 = vector.shape_cast %109 : vector<1x1x128xf32> to vector<1x128xf32>
    %111 = vector.broadcast %110 : vector<1x128xf32> to vector<16x128xf32>
    %112 = arith.addf %108, %111 : vector<16x128xf32>
    %113 = arith.addf %3, %112 : vector<16x128xf32>
    %c0_42 = arith.constant 0 : index
    %c0_43 = arith.constant 0 : index
    %c0_44 = arith.constant 0 : index
    %114 = vector.load %arg7[%c0_42, %c0_43, %c0_44] : memref<1x1x128xf32, #tpu.memory_space<vmem>>, vector<1x1x128xf32>
    %115 = vector.shape_cast %114 : vector<1x1x128xf32> to vector<1x128xf32>
    %c0_45 = arith.constant 0 : index
    %c0_46 = arith.constant 0 : index
    %c0_47 = arith.constant 0 : index
    %116 = vector.load %arg8[%c0_45, %c0_46, %c0_47] : memref<1x1x128xf32, #tpu.memory_space<vmem>>, vector<1x1x128xf32>
    %117 = vector.shape_cast %116 : vector<1x1x128xf32> to vector<1x128xf32>
    %cst_48 = arith.constant dense<0.000000e+00> : vector<16xf32>
    %118 = vector.multi_reduction <add>, %113, %cst_48 [1] : vector<16x128xf32> to vector<16xf32>
    %119 = vector.shape_cast %118 : vector<16xf32> to vector<16x1xf32>
    %cst_49 = arith.constant 1.280000e+02 : f32
    %120 = vector.broadcast %cst_49 : f32 to vector<16x1xf32>
    %121 = arith.divf %119, %120 : vector<16x1xf32>
    %122 = vector.broadcast %121 : vector<16x1xf32> to vector<16x128xf32>
    %123 = arith.subf %113, %122 : vector<16x128xf32>
    %124 = arith.mulf %123, %123 : vector<16x128xf32>
    %cst_50 = arith.constant dense<0.000000e+00> : vector<16xf32>
    %125 = vector.multi_reduction <add>, %124, %cst_50 [1] : vector<16x128xf32> to vector<16xf32>
    %126 = vector.shape_cast %125 : vector<16xf32> to vector<16x1xf32>
    %cst_51 = arith.constant 1.280000e+02 : f32
    %127 = vector.broadcast %cst_51 : f32 to vector<16x1xf32>
    %128 = arith.divf %126, %127 : vector<16x1xf32>
    %129 = vector.broadcast %121 : vector<16x1xf32> to vector<16x128xf32>
    %130 = arith.subf %113, %129 : vector<16x128xf32>
    %cst_52 = arith.constant 9.99999974E-6 : f32
    %131 = vector.broadcast %cst_52 : f32 to vector<16x1xf32>
    %132 = arith.addf %128, %131 : vector<16x1xf32>
    %133 = math.rsqrt %132 : vector<16x1xf32>
    %134 = vector.broadcast %133 : vector<16x1xf32> to vector<16x128xf32>
    %135 = arith.mulf %130, %134 : vector<16x128xf32>
    %136 = vector.broadcast %115 : vector<1x128xf32> to vector<16x128xf32>
    %137 = arith.mulf %135, %136 : vector<16x128xf32>
    %138 = vector.broadcast %117 : vector<1x128xf32> to vector<16x128xf32>
    %139 = arith.addf %137, %138 : vector<16x128xf32>
    %140 = arith.truncf %139 : vector<16x128xf32> to vector<16x128xbf16>
    %c0_53 = arith.constant 0 : index
    %c0_54 = arith.constant 0 : index
    %c0_55 = arith.constant 0 : index
    %141 = vector.load %arg9[%c0_53, %c0_54, %c0_55] : memref<1x128x512xbf16, #tpu.memory_space<vmem>>, vector<1x128x512xbf16>
    %142 = vector.shape_cast %141 : vector<1x128x512xbf16> to vector<128x512xbf16>
    %cst_56 = arith.constant dense<0.000000e+00> : vector<16x512xf32>
    %143 = tpu.matmul %140, %142, %cst_56 {dimension_numbers = #tpu.dot_dimension_numbers<[1], [0], [0], [1], [0, 0, 1, 1], [], []>} : vector<16x128xbf16>, vector<128x512xbf16>, vector<16x512xf32> -> vector<16x512xf32>
    %c0_57 = arith.constant 0 : index
    %c0_58 = arith.constant 0 : index
    %c0_59 = arith.constant 0 : index
    %144 = vector.load %arg10[%c0_57, %c0_58, %c0_59] : memref<1x1x512xf32, #tpu.memory_space<vmem>>, vector<1x1x512xf32>
    %145 = vector.shape_cast %144 : vector<1x1x512xf32> to vector<1x512xf32>
    %146 = vector.broadcast %145 : vector<1x512xf32> to vector<16x512xf32>
    %147 = arith.addf %143, %146 : vector<16x512xf32>
    %cst_60 = arith.constant 0.000000e+00 : f32
    %148 = vector.broadcast %cst_60 : f32 to vector<16x512xf32>
    %149 = arith.maximumf %147, %148 : vector<16x512xf32>
    %150 = arith.truncf %149 : vector<16x512xf32> to vector<16x512xbf16>
    %c0_61 = arith.constant 0 : index
    %c0_62 = arith.constant 0 : index
    %c0_63 = arith.constant 0 : index
    %151 = vector.load %arg11[%c0_61, %c0_62, %c0_63] : memref<1x512x128xbf16, #tpu.memory_space<vmem>>, vector<1x512x128xbf16>
    %152 = vector.shape_cast %151 : vector<1x512x128xbf16> to vector<512x128xbf16>
    %cst_64 = arith.constant dense<0.000000e+00> : vector<16x128xf32>
    %153 = tpu.matmul %150, %152, %cst_64 {dimension_numbers = #tpu.dot_dimension_numbers<[1], [0], [0], [1], [0, 0, 1, 1], [], []>} : vector<16x512xbf16>, vector<512x128xbf16>, vector<16x128xf32> -> vector<16x128xf32>
    %c0_65 = arith.constant 0 : index
    %c0_66 = arith.constant 0 : index
    %c0_67 = arith.constant 0 : index
    %154 = vector.load %arg12[%c0_65, %c0_66, %c0_67] : memref<1x1x128xf32, #tpu.memory_space<vmem>>, vector<1x1x128xf32>
    %155 = vector.shape_cast %154 : vector<1x1x128xf32> to vector<1x128xf32>
    %156 = vector.broadcast %155 : vector<1x128xf32> to vector<16x128xf32>
    %157 = arith.addf %153, %156 : vector<16x128xf32>
    %158 = arith.addf %139, %157 : vector<16x128xf32>
    %c0_68 = arith.constant 0 : index
    %c0_69 = arith.constant 0 : index
    %c0_70 = arith.constant 0 : index
    %159 = vector.load %arg13[%c0_68, %c0_69, %c0_70] : memref<1x1x128xf32, #tpu.memory_space<vmem>>, vector<1x1x128xf32>
    %160 = vector.shape_cast %159 : vector<1x1x128xf32> to vector<1x128xf32>
    %c0_71 = arith.constant 0 : index
    %c0_72 = arith.constant 0 : index
    %c0_73 = arith.constant 0 : index
    %161 = vector.load %arg14[%c0_71, %c0_72, %c0_73] : memref<1x1x128xf32, #tpu.memory_space<vmem>>, vector<1x1x128xf32>
    %162 = vector.shape_cast %161 : vector<1x1x128xf32> to vector<1x128xf32>
    %cst_74 = arith.constant dense<0.000000e+00> : vector<16xf32>
    %163 = vector.multi_reduction <add>, %158, %cst_74 [1] : vector<16x128xf32> to vector<16xf32>
    %164 = vector.shape_cast %163 : vector<16xf32> to vector<16x1xf32>
    %cst_75 = arith.constant 1.280000e+02 : f32
    %165 = vector.broadcast %cst_75 : f32 to vector<16x1xf32>
    %166 = arith.divf %164, %165 : vector<16x1xf32>
    %167 = vector.broadcast %166 : vector<16x1xf32> to vector<16x128xf32>
    %168 = arith.subf %158, %167 : vector<16x128xf32>
    %169 = arith.mulf %168, %168 : vector<16x128xf32>
    %cst_76 = arith.constant dense<0.000000e+00> : vector<16xf32>
    %170 = vector.multi_reduction <add>, %169, %cst_76 [1] : vector<16x128xf32> to vector<16xf32>
    %171 = vector.shape_cast %170 : vector<16xf32> to vector<16x1xf32>
    %cst_77 = arith.constant 1.280000e+02 : f32
    %172 = vector.broadcast %cst_77 : f32 to vector<16x1xf32>
    %173 = arith.divf %171, %172 : vector<16x1xf32>
    %174 = vector.broadcast %166 : vector<16x1xf32> to vector<16x128xf32>
    %175 = arith.subf %158, %174 : vector<16x128xf32>
    %cst_78 = arith.constant 9.99999974E-6 : f32
    %176 = vector.broadcast %cst_78 : f32 to vector<16x1xf32>
    %177 = arith.addf %173, %176 : vector<16x1xf32>
    %178 = math.rsqrt %177 : vector<16x1xf32>
    %179 = vector.broadcast %178 : vector<16x1xf32> to vector<16x128xf32>
    %180 = arith.mulf %175, %179 : vector<16x128xf32>
    %181 = vector.broadcast %160 : vector<1x128xf32> to vector<16x128xf32>
    %182 = arith.mulf %180, %181 : vector<16x128xf32>
    %183 = vector.broadcast %162 : vector<1x128xf32> to vector<16x128xf32>
    %184 = arith.addf %182, %183 : vector<16x128xf32>
    %c0_79 = arith.constant 0 : index
    %c0_80 = arith.constant 0 : index
    %185 = vector.load %arg15[%c0_79, %c0_80] : memref<16x128xf32, #tpu.memory_space<vmem>>, vector<16x128xf32>
    tpu.vector_store %arg15[%c0_79, %c0_80], %184 {strides = array<i32>} : memref<16x128xf32, #tpu.memory_space<vmem>>, vector<16x128xf32>,
    return
  }
  func.func @transform_0(%arg0: i32, %arg1: i32) -> (i32, i32) {
    %c0_i32 = arith.constant 0 : i32
    %c0_i32_0 = arith.constant 0 : i32
    return %arg0, %c0_i32 : i32, i32
  }
  func.func @transform_1(%arg0: i32, %arg1: i32) -> (i32, i32, i32) {
    %c0_i32 = arith.constant 0 : i32
    %c0_i32_0 = arith.constant 0 : i32
    %c0_i32_1 = arith.constant 0 : i32
    return %arg1, %c0_i32, %c0_i32_0 : i32, i32, i32
  }
  func.func @transform_2(%arg0: i32, %arg1: i32) -> (i32, i32, i32) {
    %c0_i32 = arith.constant 0 : i32
    %c0_i32_0 = arith.constant 0 : i32
    %c0_i32_1 = arith.constant 0 : i32
    return %arg1, %c0_i32, %c0_i32_0 : i32, i32, i32
  }
  func.func @transform_3(%arg0: i32, %arg1: i32) -> (i32, i32, i32) {
    %c0_i32 = arith.constant 0 : i32
    %c0_i32_0 = arith.constant 0 : i32
    %c0_i32_1 = arith.constant 0 : i32
    return %arg1, %c0_i32, %c0_i32_0 : i32, i32, i32
  }
  func.func @transform_4(%arg0: i32, %arg1: i32) -> (i32, i32, i32) {
    %c0_i32 = arith.constant 0 : i32
    %c0_i32_0 = arith.constant 0 : i32
    %c0_i32_1 = arith.constant 0 : i32
    return %arg1, %c0_i32, %c0_i32_0 : i32, i32, i32
  }
  func.func @transform_5(%arg0: i32, %arg1: i32) -> (i32, i32, i32) {
    %c0_i32 = arith.constant 0 : i32
    %c0_i32_0 = arith.constant 0 : i32
    %c0_i32_1 = arith.constant 0 : i32
    return %arg1, %c0_i32, %c0_i32_0 : i32, i32, i32
  }
  func.func @transform_6(%arg0: i32, %arg1: i32) -> (i32, i32, i32) {
    %c0_i32 = arith.constant 0 : i32
    %c0_i32_0 = arith.constant 0 : i32
    %c0_i32_1 = arith.constant 0 : i32
    return %arg1, %c0_i32, %c0_i32_0 : i32, i32, i32
  }
  func.func @transform_7(%arg0: i32, %arg1: i32) -> (i32, i32, i32) {
    %c0_i32 = arith.constant 0 : i32
    %c0_i32_0 = arith.constant 0 : i32
    %c0_i32_1 = arith.constant 0 : i32
    return %arg1, %c0_i32, %c0_i32_0 : i32, i32, i32
  }
  func.func @transform_8(%arg0: i32, %arg1: i32) -> (i32, i32, i32) {
    %c0_i32 = arith.constant 0 : i32
    %c0_i32_0 = arith.constant 0 : i32
    %c0_i32_1 = arith.constant 0 : i32
    return %arg1, %c0_i32, %c0_i32_0 : i32, i32, i32
  }
  func.func @transform_9(%arg0: i32, %arg1: i32) -> (i32, i32, i32) {
    %c0_i32 = arith.constant 0 : i32
    %c0_i32_0 = arith.constant 0 : i32
    %c0_i32_1 = arith.constant 0 : i32
    return %arg1, %c0_i32, %c0_i32_0 : i32, i32, i32
  }
  func.func @transform_10(%arg0: i32, %arg1: i32) -> (i32, i32, i32) {
    %c0_i32 = arith.constant 0 : i32
    %c0_i32_0 = arith.constant 0 : i32
    %c0_i32_1 = arith.constant 0 : i32
    return %arg1, %c0_i32, %c0_i32_0 : i32, i32, i32
  }
  func.func @transform_11(%arg0: i32, %arg1: i32) -> (i32, i32, i32) {
    %c0_i32 = arith.constant 0 : i32
    %c0_i32_0 = arith.constant 0 : i32
    %c0_i32_1 = arith.constant 0 : i32
    return %arg1, %c0_i32, %c0_i32_0 : i32, i32, i32
  }
  func.func @transform_12(%arg0: i32, %arg1: i32) -> (i32, i32, i32) {
    %c0_i32 = arith.constant 0 : i32
    %c0_i32_0 = arith.constant 0 : i32
    %c0_i32_1 = arith.constant 0 : i32
    return %arg1, %c0_i32, %c0_i32_0 : i32, i32, i32
  }
  func.func @transform_13(%arg0: i32, %arg1: i32) -> (i32, i32) {
    %c0_i32 = arith.constant 0 : i32
    %c0_i32_0 = arith.constant 0 : i32
    return %arg0, %c0_i32 : i32, i32
  }
}

</mosaic_0001>

<bundles_post_ra>
// kernel: encoder_forward.1
= control target key start
LH: loop header
LB: loop body
LE: loop exit
PB: predicated region body
PF: predicated region fallthrough
CT: control target
= control target key end

     0   :  { %s5448_s0 = inlined_call_operand.hbm [shape: f32[16,128], index: 0, kind: input, shape index: {}]   ;;  %s5449_s1 = inlined_call_operand.hbm [shape: bf16[2,128,384], index: 1, kind: input, shape index: {}]   ;;  %s5450_s2 = inlined_call_operand.hbm [shape: f32[2,1,384], index: 2, kind: input, shape index: {}]   ;;  %s5451_s3 = inlined_call_operand.hbm [shape: bf16[2,128,128], index: 3, kind: input, shape index: {}]   ;;  %s5452_s4 = inlined_call_operand.hbm [shape: f32[2,1,128], index: 4, kind: input, shape index: {}]   ;;  %s5453_s5 = inlined_call_operand.hbm [shape: f32[2,1,128], index: 5, kind: input, shape index: {}]   ;;  %s5454_s6 = inlined_call_operand.hbm [shape: f32[2,1,128], index: 6, kind: input, shape index: {}]   ;;  %s5455_s7 = inlined_call_operand.hbm [shape: bf16[2,128,512], index: 7, kind: input, shape index: {}]   ;;  %s5456_s8 = inlined_call_operand.hbm [shape: f32[2,1,512], index: 8, kind: input, shape index: {}]   ;;  %s5457_s9 = inlined_call_operand.hbm [shape: bf16[2,512,128], index: 9, kind: input, shape index: {}]   ;;  %s5458_s10 = inlined_call_operand.hbm [shape: f32[2,1,128], index: 10, kind: input, shape index: {}]   ;;  %s5459_s11 = inlined_call_operand.hbm [shape: f32[2,1,128], index: 11, kind: input, shape index: {}]   ;;  %s5460_s12 = inlined_call_operand.hbm [shape: f32[2,1,128], index: 12, kind: input, shape index: {}]   ;;  %s5461_s13 = inlined_call_operand.hbm [shape: f32[16,128], index: 13, kind: output, shape index: {}]  }
   0x1   :  { %5482 = sst [smem:[#allocation37_spill]] %s5449_s1 }
   0x2   :  { %5483 = sst [smem:[#allocation38_spill]] %s5451_s3 }
   0x3   :  { %5484 = sst [smem:[#allocation39_spill]] %s5453_s5 }
   0x4   :  { %5485 = sst [smem:[#allocation40_spill]] %s5455_s7 }
   0x5   :  { %5486 = sst [smem:[#allocation41_spill]] %s5456_s8 }
   0x6   :  { %5487 = sst [smem:[#allocation42_spill]] %s5457_s9 }
   0x7   :  { %5488 = sst [smem:[#allocation43_spill]] %s5458_s10 }
   0x8   :  { %5489 = sst [smem:[#allocation44_spill]] %s5459_s11 }
   0x9   :  { %5490 = sst [smem:[#allocation45_spill]] %s5460_s12 }
   0xa   :  { %5491 = sst [smem:[#allocation46_spill]] %s5461_s13 }
   0xb   :  { %18 = vsyncpa [#allocation4], 0 }
   0xc   :  { %19 = vsyncpa [#allocation7], 0 }
   0xd   :  { %21 = vsyncpa [#allocation7 + $0x1], 0 }
   0xe   :  { %22 = vsyncpa [#allocation10], 0 }
   0xf   :  { %24 = vsyncpa [#allocation10 + $0x1], 0 }
  0x10   :  { %25 = vsyncpa [#allocation13], 0 }
  0x11   :  { %27 = vsyncpa [#allocation13 + $0x1], 0 }
  0x12   :  { %28 = vsyncpa [#allocation16], 0 }
  0x13   :  { %30 = vsyncpa [#allocation16 + $0x1], 0 }
  0x14   :  { %31 = vsyncpa [#allocation19], 0 }
  0x15   :  { %33 = vsyncpa [#allocation19 + $0x1], 0 }
  0x16   :  { %34 = vsyncpa [#allocation22], 0 }
  0x17   :  { %36 = vsyncpa [#allocation22 + $0x1], 0 }
  0x18   :  { %37 = vsyncpa [#allocation5], 0  ;;  %s4529_s25 = smov 0   ;;  %s4531_s26 = smov 0  }
  0x19   :  { %s4533_s27 = smov 0   ;;  %s4535_s28 = smov 0  }
  0x1a   :  { %s4537_s29 = smov 0   ;;  %s4539_s30 = smov 0  }
  0x1b LB: > { %5492 = sst [smem:[#allocation33_spill]] %s4415_s27  ;;  %s52_s14 = sadd.s32 1, %s4423_s29  ;;  %s4427_s30 = sphi %s4539_s30, %s43_s30   ;;  %s4423_s29 = sphi %s4537_s29, %s5539_s29   ;;  %s4419_s28 = sphi %s4535_s28, %s5538_s28   ;;  %s4415_s27 = sphi %s4533_s27, %s5534_s27   ;;  %s4411_s26 = sphi %s4531_s26, %s5537_s26   ;;  %s4407_s25 = sphi %s4529_s25, %s5536_s25  }
  0x1c   : > { %5493 = sst [smem:[#allocation34_spill]] %s4419_s28  ;;  %s88_s15 = sadd.s32 1, %s4415_s27 }
  0x1d   : > { %p53_p0 = scmp.ge.s32.totalorder %s52_s14, 2  ;;  %p95_p1 = scmp.ne.s32.totalorder %s4415_s27, %s4411_s26 }
  0x1e   : > { %p96_p2 = scmp.eq.s32.totalorder %s4427_s30, 0  ;;  %p3705_p4 = scmp.lt.s32.totalorder %s4427_s30, 2 }
  0x1f   : > { %s5541_s14 = smov (%p53_p0, %s52_s14), 0  ;;  %s4570_s17 = sand.u32 1, %s4427_s30  }
  0x20   : > { %5494 = sst [smem:[#allocation35_spill]] %s5541_s14  ;;  %p97_p3 = por %p96_p2, %p95_p1 }
  0x21   : > { %s85_s16 = ssub.s32 %s4423_s29, %s5541_s14  ;;  %s4573_s18 = sand.u32 1, %s4415_s27  }
  0x22   : > { %p86_p5 = scmp.eq.s32.totalorder %s85_s16, 0  ;;  %s3626_s19 = smul.u32 3072, %s4423_s29 }
  0x23   : > { %s3625_s21 = smul.u32 192, %s4573_s18  ;;  %s5496_s1 = sld [smem:[#allocation37_spill]] }
  0x24   : > { %s4577_s20 = scalar_select %p86_p5, %s4415_s27, %s88_s15  }
  0x25   : > { %p4585_p6 = pnand %p3705_p4, %p97_p3  ;;  %s457_s16 = scalar_lea.vmem [#allocation6], %s3625_s21 }
  0x26   : > { %5495 = sst [smem:[#allocation36_spill]] %s4577_s20  ;;  %s464_s13 = sshll.u32 %s457_s16, 4  ;;  %s4589_s13 = int_to_ptr.vmem [resolvable:$true] %s464_s13 }
  0x27   : > { %s5497_s14 = scalar_select %p4585_p6, 1, 0 }
  0x28   : > { %p4596_p8 = pneg %p4585_p6 }
  0x29   : > { %s4583_s24 = scalar_lea.hbm %s5496_s1, %s3626_s19  ;;  %s3940_s27 = scalar_lea.hbm %s5496_s1, 6144 }
  0x2a   : > { %s3935_s20 = scalar_lea.hbm %s4583_s24, 3072  ;;  %p3941_p11 = scmp.lt.u32.totalorder %s4583_s24, %s5496_s1 }
  0x2b   : > { %p3936_p7 = scmp.ne.s32.totalorder %s4583_s24, %s3935_s20  ;;  %p3942_p12 = scmp.lt.u32.totalorder %s3940_s27, %s3935_s20 }
  0x2c   : > { %s5498_s19 = scalar_select %p4596_p8, 1, 0 }
  0x2d   : > { %p3938_p9 = pnand %p4596_p8, %p3936_p7  ;;  %p3943_p13 = por %p3942_p12, %p3941_p11 }
  0x2e   : > { %p3944_p0 = scmp.lt.u32.totalorder %s3935_s20, %s4583_s24 }
  0x2f   : > { %p3939_p10 = pneg %p3938_p9 }
  0x30   : > { %p3945_p1 = por %p3944_p0, %p3943_p13 }
  0x32   : > { %p3946_p2 = pnand %p3945_p1, %p3939_p10 }
  0x34   : > { %3949 = shalt.err (!%p3946_p2)
}
  0x35   : > { %s3950_s15 = scalar_lea.vmem %s4589_s13, 3072  ;;  %s4429_s22 = smov [#allocation6]  }
  0x36   : > { %p3951_p3 = scmp.ne.s32.totalorder %s4589_s13, %s3950_s15  ;;  %s3955_s23 = sshll.u32 %s4429_s22, 4  ;;  %s3956_s23 = int_to_ptr.vmem [resolvable:$false] %s3955_s23 }
  0x37   : > { %s3957_s21 = scalar_lea.vmem %s3956_s23, 6144  ;;  %p3958_p7 = scmp.lt.s32.totalorder %s4589_s13, %s3956_s23 }
  0x38   : > { %p3953_p4 = pnand %p3951_p3, %p4596_p8  ;;  %p3959_p9 = scmp.lt.s32.totalorder %s3957_s21, %s3950_s15 }
  0x3a   : > { %p3954_p5 = pneg %p3953_p4  ;;  %p3960_p11 = por %p3959_p9, %p3958_p7 }
  0x3c   : > { %p3961_p12 = pnand %p3960_p11, %p3954_p5 }
  0x3e   : > { %3964 = shalt.err (!%p3961_p12)
}
  0x3f   : > { %s4430_s27 = smov 192   ;;  %s4431_s20 = smov 12  }
  0x40   : > { %s5499_s16 = scalar_lea.sflag [#allocation7], %s4570_s17  ;;  %s3232_s22 = sshll.u32 %s4573_s18, 6 }
  0x41   : > { %3670 = dma.hbm_to_vmem [thread:$0]  (!%p4585_p6), %s4583_s24, 3072, %s4589_s13, %s5499_s16, %s4430_s27, %s4430_s27, %s4431_s20  }
  0x42   : > { %s3385_s1 = sshll.u32 %s4423_s29, 10  ;;  %s5500_s3 = sld [smem:[#allocation38_spill]] }
  0x43   : > { %s497_s28 = scalar_lea.vmem [#allocation9], %s3232_s22  ;;  %s5468_s10 = scalar_lea.sflag [#allocation10], %s4570_s17 }
  0x44   : > { %s504_s12 = sshll.u32 %s497_s28, 4  ;;  %s4628_s12 = int_to_ptr.vmem [resolvable:$true] %s504_s12 }
  0x48   : > { %s4626_s21 = scalar_lea.hbm %s5500_s3, %s3385_s1  ;;  %s3970_s27 = scalar_lea.hbm %s5500_s3, 2048 }
  0x49   : > { %s3965_s8 = scalar_lea.hbm %s4626_s21, 1024  ;;  %p3971_p1 = scmp.lt.u32.totalorder %s4626_s21, %s5500_s3 }
  0x4a   : > { %p3966_p10 = scmp.ne.s32.totalorder %s4626_s21, %s3965_s8  ;;  %p3972_p2 = scmp.lt.u32.totalorder %s3970_s27, %s3965_s8 }
  0x4b   : > { %p3974_p4 = scmp.lt.u32.totalorder %s3965_s8, %s4626_s21 }
  0x4c   : > { %p3968_p13 = pnand %p3966_p10, %p4596_p8  ;;  %p3973_p3 = por %p3972_p2, %p3971_p1 }
  0x4e   : > { %p3969_p0 = pneg %p3968_p13  ;;  %p3975_p5 = por %p3974_p4, %p3973_p3 }
  0x50   : > { %p3976_p7 = pnand %p3975_p5, %p3969_p0 }
  0x52   : > { %3979 = shalt.err (!%p3976_p7)
}
  0x53   : > { %s3980_s28 = scalar_lea.vmem %s4628_s12, 1024  ;;  %s4432_s16 = smov [#allocation9]  }
  0x54   : > { %p3981_p9 = scmp.ne.s32.totalorder %s4628_s12, %s3980_s28  ;;  %s3985_s22 = sshll.u32 %s4432_s16, 4  ;;  %s3986_s22 = int_to_ptr.vmem [resolvable:$false] %s3985_s22 }
  0x55   : > { %s3987_s23 = scalar_lea.vmem %s3986_s22, 2048  ;;  %p3988_p10 = scmp.lt.s32.totalorder %s4628_s12, %s3986_s22 }
  0x56   : > { %p3983_p11 = pnand %p3981_p9, %p4596_p8  ;;  %p3989_p13 = scmp.lt.s32.totalorder %s3987_s23, %s3980_s28 }
  0x58   : > { %p3984_p12 = pneg %p3983_p11  ;;  %p3990_p1 = por %p3989_p13, %p3988_p10 }
  0x5a   : > { %p3991_p2 = pnand %p3990_p1, %p3984_p12 }
  0x5c   : > { %3994 = shalt.err (!%p3991_p2)
}
  0x5d   : > { %s5469_s8 = smov 64   ;;  %s5471_s15 = smov 4  }
  0x5e   : > { %3676 = dma.hbm_to_vmem [thread:$0]  (!%p4585_p6), %s4626_s21, 1024, %s4628_s12, %s5468_s10, %s5469_s8, %s5469_s8, %s5471_s15  }
  0x5f   : > { %s4658_s13 = sshll.u32 %s4423_s29, 4  ;;  %s5501_s5 = sld [smem:[#allocation39_spill]] }
  0x60   : > { %s534_s20 = scalar_lea.vmem [#allocation12], %s4573_s18  ;;  %s3238_s16 = sshll.u32 %s4573_s18, 8 }
  0x61   : > { %s541_s28 = sshll.u32 %s534_s20, 4  ;;  %s5470_s22 = scalar_lea.sflag [#allocation13], %s4570_s17  ;;  %s4667_s28 = int_to_ptr.vmem [resolvable:$true] %s541_s28 }
  0x65   : > { %s4664_s1 = scalar_lea.hbm %s5501_s5, %s4658_s13  ;;  %s4000_s24 = scalar_lea.hbm %s5501_s5, 32 }
  0x66   : > { %s3995_s23 = scalar_lea.hbm %s4664_s1, 16  ;;  %p4001_p5 = scmp.lt.u32.totalorder %s4664_s1, %s5501_s5 }
  0x67   : > { %p3996_p0 = scmp.ne.s32.totalorder %s4664_s1, %s3995_s23  ;;  %p4002_p7 = scmp.lt.u32.totalorder %s4000_s24, %s3995_s23 }
  0x68   : > { %p4004_p11 = scmp.lt.u32.totalorder %s3995_s23, %s4664_s1 }
  0x69   : > { %p3998_p3 = pnand %p3996_p0, %p4596_p8  ;;  %p4003_p9 = por %p4002_p7, %p4001_p5 }
  0x6b   : > { %p3999_p4 = pneg %p3998_p3  ;;  %p4005_p12 = por %p4004_p11, %p4003_p9 }
  0x6d   : > { %p4006_p10 = pnand %p4005_p12, %p3999_p4 }
  0x6f   : > { %4009 = shalt.err (!%p4006_p10)
}
  0x70   : > { %s4010_s20 = scalar_lea.vmem %s4667_s28, 16  ;;  %s4435_s12 = smov [#allocation12]  }
  0x71   : > { %p4011_p13 = scmp.ne.s32.totalorder %s4667_s28, %s4010_s20  ;;  %s4015_s21 = sshll.u32 %s4435_s12, 4  ;;  %s4016_s21 = int_to_ptr.vmem [resolvable:$false] %s4015_s21 }
  0x72   : > { %s4017_s10 = scalar_lea.vmem %s4016_s21, 32  ;;  %p4018_p0 = scmp.lt.s32.totalorder %s4667_s28, %s4016_s21 }
  0x73   : > { %p4013_p1 = pnand %p4011_p13, %p4596_p8  ;;  %p4019_p3 = scmp.lt.s32.totalorder %s4017_s10, %s4010_s20 }
  0x75   : > { %p4014_p2 = pneg %p4013_p1  ;;  %p4020_p5 = por %p4019_p3, %p4018_p0 }
  0x77   : > { %p4021_p7 = pnand %p4020_p5, %p4014_p2 }
  0x79   : > { %4024 = shalt.err (!%p4021_p7)
}
  0x7a   : > { %3682 = dma.hbm_to_vmem [thread:$0]  (!%p4585_p6), %s4664_s1, 16, %s4667_s28, %s5470_s22  }
  0x7b   : > { %s3386_s23 = sshll.u32 %s4423_s29, 12  ;;  %s5502_s7 = sld [smem:[#allocation40_spill]] }
  0x7c   : > { %s569_s12 = scalar_lea.vmem [#allocation15], %s3238_s16  ;;  %s5476_s10 = scalar_lea.sflag [#allocation16], %s4570_s17 }
  0x7d   : > { %s576_s21 = sshll.u32 %s569_s12, 4  ;;  %s4704_s21 = int_to_ptr.vmem [resolvable:$true] %s576_s21 }
  0x81   : > { %s4700_s20 = scalar_lea.hbm %s5502_s7, %s3386_s23  ;;  %s4030_s24 = scalar_lea.hbm %s5502_s7, 8192 }
  0x82   : > { %s4025_s8 = scalar_lea.hbm %s4700_s20, 4096  ;;  %p4031_p12 = scmp.lt.u32.totalorder %s4700_s20, %s5502_s7 }
  0x83   : > { %p4026_p4 = scmp.ne.s32.totalorder %s4700_s20, %s4025_s8  ;;  %p4032_p10 = scmp.lt.u32.totalorder %s4030_s24, %s4025_s8 }
  0x84   : > { %p4034_p1 = scmp.lt.u32.totalorder %s4025_s8, %s4700_s20 }
  0x85   : > { %p4028_p9 = pnand %p4026_p4, %p4596_p8  ;;  %p4033_p13 = por %p4032_p10, %p4031_p12 }
  0x87   : > { %p4029_p11 = pneg %p4028_p9  ;;  %p4035_p2 = por %p4034_p1, %p4033_p13 }
  0x89   : > { %p4036_p0 = pnand %p4035_p2, %p4029_p11 }
  0x8b   : > { %4039 = shalt.err (!%p4036_p0)
}
  0x8c   : > { %s4040_s12 = scalar_lea.vmem %s4704_s21, 4096  ;;  %s4436_s1 = smov [#allocation15]  }
  0x8d   : > { %p4041_p3 = scmp.ne.s32.totalorder %s4704_s21, %s4040_s12  ;;  %s4045_s28 = sshll.u32 %s4436_s1, 4  ;;  %s4046_s28 = int_to_ptr.vmem [resolvable:$false] %s4045_s28 }
  0x8e   : > { %s4047_s22 = scalar_lea.vmem %s4046_s28, 8192  ;;  %p4048_p4 = scmp.lt.s32.totalorder %s4704_s21, %s4046_s28 }
  0x8f   : > { %p4043_p5 = pnand %p4041_p3, %p4596_p8  ;;  %p4049_p9 = scmp.lt.s32.totalorder %s4047_s22, %s4040_s12 }
  0x91   : > { %p4044_p7 = pneg %p4043_p5  ;;  %p4050_p12 = por %p4049_p9, %p4048_p4 }
  0x93   : > { %p4051_p10 = pnand %p4050_p12, %p4044_p7 }
  0x95   : > { %4054 = shalt.err (!%p4051_p10)
}
  0x96   : > { %s4437_s8 = smov 256   ;;  %s4438_s24 = smov 16  }
  0x97   : > { %3688 = dma.hbm_to_vmem [thread:$0]  (!%p4585_p6), %s4700_s20, 4096, %s4704_s21, %s5476_s10, %s4437_s8, %s4437_s8, %s4438_s24  }
  0x98   : > { %s5503_s9 = sld [smem:[#allocation42_spill]]  ;;  %s609_s28 = scalar_lea.vmem [#allocation18], %s3238_s16 }
  0x99   : > { %s616_s22 = sshll.u32 %s609_s28, 4  ;;  %s5475_s15 = scalar_lea.sflag [#allocation19], %s4570_s17  ;;  %s4739_s22 = int_to_ptr.vmem [resolvable:$true] %s616_s22 }
  0x9e   : > { %s4735_s12 = scalar_lea.hbm %s5503_s9, %s3386_s23  ;;  %s4060_s23 = scalar_lea.hbm %s5503_s9, 8192 }
  0x9f   : > { %s4055_s3 = scalar_lea.hbm %s4735_s12, 4096  ;;  %p4061_p2 = scmp.lt.u32.totalorder %s4735_s12, %s5503_s9 }
  0xa0   : > { %p4056_p11 = scmp.ne.s32.totalorder %s4735_s12, %s4055_s3  ;;  %p4062_p0 = scmp.lt.u32.totalorder %s4060_s23, %s4055_s3 }
  0xa1   : > { %p4064_p5 = scmp.lt.u32.totalorder %s4055_s3, %s4735_s12 }
  0xa2   : > { %p4058_p13 = pnand %p4056_p11, %p4596_p8  ;;  %p4063_p3 = por %p4062_p0, %p4061_p2 }
  0xa4   : > { %p4059_p1 = pneg %p4058_p13  ;;  %p4065_p7 = por %p4064_p5, %p4063_p3 }
  0xa6   : > { %p4066_p4 = pnand %p4065_p7, %p4059_p1 }
  0xa8   : > { %4069 = shalt.err (!%p4066_p4)
}
  0xa9   : > { %s4070_s16 = scalar_lea.vmem %s4739_s22, 4096  ;;  %s4439_s27 = smov [#allocation18]  }
  0xaa   : > { %p4071_p9 = scmp.ne.s32.totalorder %s4739_s22, %s4070_s16  ;;  %s4075_s1 = sshll.u32 %s4439_s27, 4  ;;  %s4076_s1 = int_to_ptr.vmem [resolvable:$false] %s4075_s1 }
  0xab   : > { %s4077_s28 = scalar_lea.vmem %s4076_s1, 8192  ;;  %p4078_p11 = scmp.lt.s32.totalorder %s4739_s22, %s4076_s1 }
  0xac   : > { %p4073_p12 = pnand %p4071_p9, %p4596_p8  ;;  %p4079_p13 = scmp.lt.s32.totalorder %s4077_s28, %s4070_s16 }
  0xae   : > { %p4074_p10 = pneg %p4073_p12  ;;  %p4080_p2 = por %p4079_p13, %p4078_p11 }
  0xb0   : > { %p4081_p0 = pnand %p4080_p2, %p4074_p10 }
  0xb2   : > { %4084 = shalt.err (!%p4081_p0)
}
  0xb3   : > { %s5504_s3 = smov 4   ;;  %s5505_s20 = smov 64  }
  0xb4   : > { %3694 = dma.hbm_to_vmem [thread:$0]  (!%p4585_p6), %s4735_s12, 4096, %s4739_s22, %s5475_s15, %s5505_s20, %s5505_s20, %s5504_s3  }
  0xb5   : > { %s5506_s11 = sld [smem:[#allocation44_spill]]  ;;  %s646_s24 = scalar_lea.vmem [#allocation21], %s4573_s18 }
  0xb6   : > { %s653_s16 = sshll.u32 %s646_s24, 4  ;;  %s5474_s27 = scalar_lea.sflag [#allocation22], %s4570_s17  ;;  %s654_s16 = int_to_ptr.vmem [resolvable:$true] %s653_s16 }
  0xbb   : > { %s4772_s8 = scalar_lea.hbm %s5506_s11, %s4658_s13  ;;  %s4090_s22 = scalar_lea.hbm %s5506_s11, 32 }
  0xbc   : > { %s4085_s1 = scalar_lea.hbm %s4772_s8, 16  ;;  %p4091_p7 = scmp.lt.u32.totalorder %s4772_s8, %s5506_s11 }
  0xbd   : > { %p4086_p1 = scmp.ne.s32.totalorder %s4772_s8, %s4085_s1  ;;  %p4092_p4 = scmp.lt.u32.totalorder %s4090_s22, %s4085_s1 }
  0xbe   : > { %p4094_p12 = scmp.lt.u32.totalorder %s4085_s1, %s4772_s8 }
  0xbf   : > { %p4088_p3 = pnand %p4086_p1, %p4596_p8  ;;  %p4093_p9 = por %p4092_p4, %p4091_p7 }
  0xc1   : > { %p4089_p5 = pneg %p4088_p3  ;;  %p4095_p10 = por %p4094_p12, %p4093_p9 }
  0xc3   : > { %p4096_p11 = pnand %p4095_p10, %p4089_p5 }
  0xc5   : > { %4099 = shalt.err (!%p4096_p11)
}
  0xc6   : > { %s4100_s21 = scalar_lea.vmem %s654_s16, 16  ;;  %s4440_s23 = smov [#allocation21]  }
  0xc7   : > { %p4101_p13 = scmp.ne.s32.totalorder %s654_s16, %s4100_s21  ;;  %s4105_s24 = sshll.u32 %s4440_s23, 4  ;;  %s4106_s24 = int_to_ptr.vmem [resolvable:$false] %s4105_s24 }
  0xc8   : > { %s4107_s28 = scalar_lea.vmem %s4106_s24, 32  ;;  %p4108_p1 = scmp.lt.s32.totalorder %s654_s16, %s4106_s24 }
  0xc9   : > { %p4103_p2 = pnand %p4101_p13, %p4596_p8  ;;  %p4109_p3 = scmp.lt.s32.totalorder %s4107_s28, %s4100_s21 }
  0xcb   : > { %p4104_p0 = pneg %p4103_p2  ;;  %p4110_p6 = por %p4109_p3, %p4108_p1 }
  0xcd   : > { %p4111_p4 = pnand %p4110_p6, %p4104_p0 }
  0xcf   : > { %4114 = shalt.err (!%p4111_p4)
}
  0xd0   : > { %p5507_p7 = scmp.ne.s32.totalorder %s5497_s14, 0  ;;  %s4796_s1 = sadd.s32 4294967295, %s4427_s30  }
  0xd1   : > { %p101_p6 = scmp.ne.s32.totalorder %s4411_s26, %s4407_s25  ;;  %p5477_p5 = scmp.eq.s32.totalorder %s4796_s1, 0 }
  0xd2   : > { %3700 = dma.hbm_to_vmem [thread:$0]  (!%p5507_p7), %s4772_s8, 16, %s654_s16, %s5474_s27  }
  0xd3   : > { %p3227_p9 = scmp.ge.s32.totalorder %s4427_s30, 1  ;;  %p424_p12 = scmp.lt.s32.totalorder %s4427_s30, 3 }
  0xd4   : > { %p4805_p10 = por %p5477_p5, %p101_p6  ;;  %s4441_s8 = smov [#allocation3]  }
  0xd5   : > { %p4809_p11 = pnand %p3227_p9, %p424_p12  ;;  %s439_s16 = sshll.u32 %s4441_s8, 4  ;;  %s440_s16 = int_to_ptr.vmem [resolvable:$true] %s439_s16 }
  0xd6   : > { %s5508_s12 = scalar_select %p4805_p10, 1, 0 }
  0xd7   : > { %s5509_s22 = scalar_select %p4809_p11, 1, 0 }
  0xd8   : > { %p3663_p13 = pneg %p4809_p11  ;;  %s3627_s3 = smul.u32 3, %s4573_s18 }
  0xd9   : > { %s3628_s20 = smul.u32 48, %s4423_s29  ;;  %s4115_s8 = scalar_lea.hbm %s5448_s0, 256 }
  0xda   : > { %p4818_p2 = pnand %p3663_p13, %p5477_p5  ;;  %p4116_p0 = scmp.ne.s32.totalorder %s5448_s0, %s4115_s8 }
  0xdb   : > { %s4826_s24 = scalar_lea.hbm %s5450_s2, %s3628_s20  ;;  %p4122_p6 = scmp.lt.u32.totalorder %s4115_s8, %s5448_s0 }
  0xdc   : > { %p4117_p1 = pneg %p4818_p2 }
  0xde   : > { %p4118_p3 = pnand %p4117_p1, %p4116_p0 }
  0xe0   : > { %p4119_p4 = pneg %p4118_p3 }
  0xe2   : > { %p4124_p9 = pnand %p4122_p6, %p4119_p4 }
  0xe4   : > { %4127 = shalt.err (!%p4124_p9)
}
  0xe5   : > { %s4128_s20 = scalar_lea.vmem %s440_s16, 256  ;;  %p4136_p10 = scmp.lt.s32.totalorder %s440_s16, %s440_s16 }
  0xe6   : > { %p4129_p12 = scmp.ne.s32.totalorder %s440_s16, %s4128_s20  ;;  %p4137_p11 = scmp.lt.s32.totalorder %s4128_s20, %s4128_s20 }
  0xe8   : > { %p4131_p13 = pnand %p4129_p12, %p4117_p1  ;;  %p4138_p7 = por %p4137_p11, %p4136_p10 }
  0xea   : > { %p4132_p5 = pneg %p4131_p13 }
  0xec   : > { %p4139_p8 = pnand %p4138_p7, %p4132_p5 }
  0xee   : > { %4142 = shalt.err (!%p4139_p8)
}
  0xef   : > { %s4442_s15 = smov 128   ;;  %s4443_s5 = smov 8  }
  0xf0   : > { %3666 = dma.hbm_to_vmem [thread:$0]  (!%p4818_p2), %s5448_s0, 256, %s440_s16, [#allocation4], %s4442_s15, %s4442_s15, %s4443_s5  }
  0xf1   : > { %s478_s27 = scalar_lea.vmem [#allocation8], %s3627_s3  ;;  %s4848_s8 = scalar_lea.hbm %s5452_s4, %s4658_s13 }
  0xf2   : > { %s486_s21 = sshll.u32 %s478_s27, 4  ;;  %s517_s20 = scalar_lea.vmem [#allocation11], %s4573_s18  ;;  %s4850_s21 = int_to_ptr.vmem [resolvable:$true] %s486_s21 }
  0xf3   : > { %s524_s9 = sshll.u32 %s517_s20, 4  ;;  %s4143_s11 = scalar_lea.hbm %s4826_s24, 48  ;;  %s525_s9 = int_to_ptr.vmem [resolvable:$true] %s524_s9 }
  0xf4   : > { %p4144_p8 = scmp.ne.s32.totalorder %s4826_s24, %s4143_s11  ;;  %p5511_p7 = scmp.ne.s32.totalorder %s5498_s19, 0 }
  0xf5   : > { %s4148_s16 = scalar_lea.hbm %s5450_s2, 96  ;;  %p4149_p11 = scmp.lt.u32.totalorder %s4826_s24, %s5450_s2 }
  0xf6   : > { %p4146_p5 = pnand %p4144_p8, %p5511_p7  ;;  %p4150_p2 = scmp.lt.u32.totalorder %s4148_s16, %s4143_s11 }
  0xf7   : > { %p4152_p1 = scmp.lt.u32.totalorder %s4143_s11, %s4826_s24 }
  0xf8   : > { %p4147_p10 = pneg %p4146_p5  ;;  %p4151_p0 = por %p4150_p2, %p4149_p11 }
  0xfa   : > { %p4153_p3 = por %p4152_p1, %p4151_p0 }
  0xfc   : > { %p4154_p4 = pnand %p4153_p3, %p4147_p10 }
  0xfe   : > { %4157 = shalt.err (!%p4154_p4)
}
  0xff   : > { %s4158_s5 = scalar_lea.vmem %s4850_s21, 48  ;;  %s4444_s10 = smov [#allocation8]  }
 0x100   : > { %p4159_p6 = scmp.ne.s32.totalorder %s4850_s21, %s4158_s5  ;;  %s4163_s27 = sshll.u32 %s4444_s10, 4  ;;  %s4164_s27 = int_to_ptr.vmem [resolvable:$false] %s4163_s27 }
 0x101   : > { %s4165_s23 = scalar_lea.vmem %s4164_s27, 96  ;;  %p4166_p13 = scmp.lt.s32.totalorder %s4850_s21, %s4164_s27 }
 0x102   : > { %p4161_p9 = pnand %p4159_p6, %p5511_p7  ;;  %p4167_p8 = scmp.lt.s32.totalorder %s4165_s23, %s4158_s5 }
 0x104   : > { %p4162_p12 = pneg %p4161_p9  ;;  %p4168_p5 = por %p4167_p8, %p4166_p13 }
 0x106   : > { %p4169_p11 = pnand %p4168_p5, %p4162_p12 }
 0x108   : > { %4172 = shalt.err (!%p4169_p11)
}
 0x109   : > { %p5512_p10 = scmp.ne.s32.totalorder %s5497_s14, 0  ;;  %s5513_s11 = scalar_lea.sflag [#allocation7], %s4570_s17 }
 0x10a   : > { %s4173_s28 = scalar_lea.hbm %s4848_s8, 16  ;;  %s4178_s7 = scalar_lea.hbm %s5452_s4, 32 }
 0x10b   : > { %3673 = dma.hbm_to_vmem [thread:$0]  (!%p5512_p10), %s4826_s24, 48, %s4850_s21, %s5513_s11  }
 0x10c   : > { %p4174_p2 = scmp.ne.s32.totalorder %s4848_s8, %s4173_s28  ;;  %p4179_p3 = scmp.lt.u32.totalorder %s4848_s8, %s5452_s4 }
 0x10d   : > { %p4180_p4 = scmp.lt.u32.totalorder %s4178_s7, %s4173_s28  ;;  %p4182_p9 = scmp.lt.u32.totalorder %s4173_s28, %s4848_s8 }
 0x10e   : > { %p4176_p0 = pnand %p4174_p2, %p5511_p7 }
 0x10f   : > { %p4181_p6 = por %p4180_p4, %p4179_p3 }
 0x110   : > { %p4177_p1 = pneg %p4176_p0 }
 0x111   : > { %p4183_p12 = por %p4182_p9, %p4181_p6 }
 0x113   : > { %p4184_p13 = pnand %p4183_p12, %p4177_p1 }
 0x115   : > { %4187 = shalt.err (!%p4184_p13)
}
 0x116   : > { %s4188_s24 = scalar_lea.vmem %s525_s9, 16  ;;  %s4445_s21 = smov [#allocation11]  }
 0x117   : > { %p4189_p8 = scmp.ne.s32.totalorder %s525_s9, %s4188_s24  ;;  %s4193_s15 = sshll.u32 %s4445_s21, 4  ;;  %s4194_s15 = int_to_ptr.vmem [resolvable:$false] %s4193_s15 }
 0x118   : > { %s4195_s5 = scalar_lea.vmem %s4194_s15, 32  ;;  %p4196_p2 = scmp.lt.s32.totalorder %s525_s9, %s4194_s15 }
 0x119   : > { %p4191_p5 = pnand %p4189_p8, %p5511_p7  ;;  %p4197_p0 = scmp.lt.s32.totalorder %s4195_s5, %s4188_s24 }
 0x11b   : > { %p4192_p11 = pneg %p4191_p5  ;;  %p4198_p10 = por %p4197_p0, %p4196_p2 }
 0x11d   : > { %p4199_p3 = pnand %p4198_p10, %p4192_p11 }
 0x11f   : > { %4202 = shalt.err (!%p4199_p3)
}
 0x120   : > { %p5514_p4 = scmp.ne.s32.totalorder %s5497_s14, 0  ;;  %s5515_s10 = scalar_lea.sflag [#allocation10], %s4570_s17 }
 0x121   : > { %s4899_s11 = scalar_lea.hbm %s5454_s6, %s4658_s13  ;;  %s551_s28 = scalar_lea.vmem [#allocation14], %s4573_s18 }
 0x122   : > { %3679 = dma.hbm_to_vmem [thread:$0]  (!%p5514_p4), %s4848_s8, 16, %s525_s9, %s5515_s10  }
 0x123   : > { %s558_s20 = sshll.u32 %s551_s28, 4  ;;  %s3241_s25 = sshll.u32 %s4573_s18, 2  ;;  %s559_s20 = int_to_ptr.vmem [resolvable:$true] %s558_s20 }
 0x124   : > { %s4203_s7 = scalar_lea.hbm %s4899_s11, 16  ;;  %s4208_s8 = scalar_lea.hbm %s5454_s6, 32 }
 0x125   : > { %p4204_p10 = scmp.ne.s32.totalorder %s4899_s11, %s4203_s7  ;;  %p4209_p9 = scmp.lt.u32.totalorder %s4899_s11, %s5454_s6 }
 0x126   : > { %p4210_p12 = scmp.lt.u32.totalorder %s4208_s8, %s4203_s7  ;;  %p4212_p8 = scmp.lt.u32.totalorder %s4203_s7, %s4899_s11 }
 0x127   : > { %p4206_p1 = pnand %p4204_p10, %p5511_p7 }
 0x128   : > { %p4211_p13 = por %p4210_p12, %p4209_p9 }
 0x129   : > { %p4207_p6 = pneg %p4206_p1 }
 0x12a   : > { %p4213_p5 = por %p4212_p8, %p4211_p13 }
 0x12c   : > { %p4214_p11 = pnand %p4213_p5, %p4207_p6 }
 0x12e   : > { %4217 = shalt.err (!%p4214_p11)
}
 0x12f   : > { %s4218_s21 = scalar_lea.vmem %s559_s20, 16  ;;  %s4446_s15 = smov [#allocation14]  }
 0x130   : > { %p4219_p2 = scmp.ne.s32.totalorder %s559_s20, %s4218_s21  ;;  %s4223_s5 = sshll.u32 %s4446_s15, 4  ;;  %s4224_s5 = int_to_ptr.vmem [resolvable:$false] %s4223_s5 }
 0x131   : > { %s4225_s10 = scalar_lea.vmem %s4224_s5, 32  ;;  %p4226_p10 = scmp.lt.s32.totalorder %s559_s20, %s4224_s5 }
 0x132   : > { %p4221_p0 = pnand %p4219_p2, %p5511_p7  ;;  %p4227_p1 = scmp.lt.s32.totalorder %s4225_s10, %s4218_s21 }
 0x134   : > { %p4222_p3 = pneg %p4221_p0  ;;  %p4228_p4 = por %p4227_p1, %p4226_p10 }
 0x136   : > { %p4229_p9 = pnand %p4228_p4, %p4222_p3 }
 0x138   : > { %4232 = shalt.err (!%p4229_p9)
}
 0x139   : > { %p5516_p12 = scmp.ne.s32.totalorder %s5497_s14, 0  ;;  %s5517_s27 = scalar_lea.sflag [#allocation13], %s4570_s17 }
 0x13a   : > { %s3387_s23 = sshll.u32 %s4423_s29, 6  ;;  %s5518_s16 = sld [smem:[#allocation41_spill]] }
 0x13b   : > { %3685 = dma.hbm_to_vmem [thread:$0]  (!%p5516_p12), %s4899_s11, 16, %s559_s20, %s5517_s27  }
 0x13c   : > { %s590_s8 = scalar_lea.vmem [#allocation17], %s3241_s25 }
 0x13d   : > { %s598_s3 = sshll.u32 %s590_s8, 4  ;;  %s599_s3 = int_to_ptr.vmem [resolvable:$true] %s598_s3 }
 0x140   : > { %s4926_s9 = scalar_lea.hbm %s5518_s16, %s3387_s23  ;;  %s4238_s21 = scalar_lea.hbm %s5518_s16, 128 }
 0x141   : > { %s4233_s24 = scalar_lea.hbm %s4926_s9, 64  ;;  %p4239_p8 = scmp.lt.u32.totalorder %s4926_s9, %s5518_s16 }
 0x142   : > { %p4234_p4 = scmp.ne.s32.totalorder %s4926_s9, %s4233_s24  ;;  %p4240_p5 = scmp.lt.u32.totalorder %s4238_s21, %s4233_s24 }
 0x143   : > { %p4242_p2 = scmp.lt.u32.totalorder %s4233_s24, %s4926_s9 }
 0x144   : > { %p4236_p6 = pnand %p4234_p4, %p5511_p7  ;;  %p4241_p11 = por %p4240_p5, %p4239_p8 }
 0x146   : > { %p4237_p13 = pneg %p4236_p6  ;;  %p4243_p0 = por %p4242_p2, %p4241_p11 }
 0x148   : > { %p4244_p3 = pnand %p4243_p0, %p4237_p13 }
 0x14a   : > { %4247 = shalt.err (!%p4244_p3)
}
 0x14b   : > { %s4248_s25 = scalar_lea.vmem %s599_s3, 64  ;;  %s4447_s10 = smov [#allocation17]  }
 0x14c   : > { %p4249_p10 = scmp.ne.s32.totalorder %s599_s3, %s4248_s25  ;;  %s4253_s27 = sshll.u32 %s4447_s10, 4  ;;  %s4254_s27 = int_to_ptr.vmem [resolvable:$false] %s4253_s27 }
 0x14d   : > { %s4255_s23 = scalar_lea.vmem %s4254_s27, 128  ;;  %p4256_p4 = scmp.lt.s32.totalorder %s599_s3, %s4254_s27 }
 0x14e   : > { %p4251_p1 = pnand %p4249_p10, %p5511_p7  ;;  %p4257_p6 = scmp.lt.s32.totalorder %s4255_s23, %s4248_s25 }
 0x150   : > { %p4252_p9 = pneg %p4251_p1  ;;  %p4258_p12 = por %p4257_p6, %p4256_p4 }
 0x152   : > { %p4259_p5 = pnand %p4258_p12, %p4252_p9 }
 0x154   : > { %4262 = shalt.err (!%p4259_p5)
}
 0x155   : > { %p5519_p8 = scmp.ne.s32.totalorder %s5497_s14, 0  ;;  %s5520_s28 = scalar_lea.sflag [#allocation16], %s4570_s17 }
 0x156   : > { %s5521_s24 = sld [smem:[#allocation43_spill]]  ;;  %s629_s20 = scalar_lea.vmem [#allocation20], %s4573_s18 }
 0x157   : > { %3691 = dma.hbm_to_vmem [thread:$0]  (!%p5519_p8), %s4926_s9, 64, %s599_s3, %s5520_s28  }
 0x158   : > { %s636_s21 = sshll.u32 %s629_s20, 4  ;;  %s637_s21 = int_to_ptr.vmem [resolvable:$true] %s636_s21 }
 0x15c   : > { %s4953_s11 = scalar_lea.hbm %s5521_s24, %s4658_s13  ;;  %s4268_s9 = scalar_lea.hbm %s5521_s24, 32 }
 0x15d   : > { %s4263_s15 = scalar_lea.hbm %s4953_s11, 16  ;;  %p4269_p2 = scmp.lt.u32.totalorder %s4953_s11, %s5521_s24 }
 0x15e   : > { %p4264_p12 = scmp.ne.s32.totalorder %s4953_s11, %s4263_s15  ;;  %p4270_p0 = scmp.lt.u32.totalorder %s4268_s9, %s4263_s15 }
 0x15f   : > { %p4272_p10 = scmp.lt.u32.totalorder %s4263_s15, %s4953_s11 }
 0x160   : > { %p4266_p13 = pnand %p4264_p12, %p5511_p7  ;;  %p4271_p3 = por %p4270_p0, %p4269_p2 }
 0x162   : > { %p4267_p11 = pneg %p4266_p13  ;;  %p4273_p1 = por %p4272_p10, %p4271_p3 }
 0x164   : > { %p4274_p9 = pnand %p4273_p1, %p4267_p11 }
 0x166   : > { %4277 = shalt.err (!%p4274_p9)
}
 0x167   : > { %s4278_s27 = scalar_lea.vmem %s637_s21, 16  ;;  %s4448_s23 = smov [#allocation20]  }
 0x168   : > { %p4279_p4 = scmp.ne.s32.totalorder %s637_s21, %s4278_s27  ;;  %s4283_s28 = sshll.u32 %s4448_s23, 4  ;;  %s4284_s28 = int_to_ptr.vmem [resolvable:$false] %s4283_s28 }
 0x169   : > { %s4285_s7 = scalar_lea.vmem %s4284_s28, 32  ;;  %p4286_p12 = scmp.lt.s32.totalorder %s637_s21, %s4284_s28 }
 0x16a   : > { %p4281_p6 = pnand %p4279_p4, %p5511_p7  ;;  %p4287_p13 = scmp.lt.s32.totalorder %s4285_s7, %s4278_s27 }
 0x16c   : > { %p4282_p5 = pneg %p4281_p6  ;;  %p4288_p8 = por %p4287_p13, %p4286_p12 }
 0x16e   : > { %p4289_p0 = pnand %p4288_p8, %p4282_p5 }
 0x170   : > { %4292 = shalt.err (!%p4289_p0)
}
 0x171   : > { %p5522_p2 = scmp.ne.s32.totalorder %s5497_s14, 0  ;;  %s5523_s8 = scalar_lea.sflag [#allocation19], %s4570_s17 }
 0x172   : > { %s5524_s5 = sld [smem:[#allocation45_spill]]  ;;  %s663_s9 = scalar_lea.vmem [#allocation23], %s4573_s18 }
 0x173   : > { %3697 = dma.hbm_to_vmem [thread:$0]  (!%p5522_p2), %s4953_s11, 16, %s637_s21, %s5523_s8  }
 0x174   : > { %s670_s3 = sshll.u32 %s663_s9, 4  ;;  %s671_s3 = int_to_ptr.vmem [resolvable:$true] %s670_s3 }
 0x178   : > { %s4979_s25 = scalar_lea.hbm %s5524_s5, %s4658_s13  ;;  %s4298_s11 = scalar_lea.hbm %s5524_s5, 32 }
 0x179   : > { %s4293_s10 = scalar_lea.hbm %s4979_s25, 16  ;;  %p4299_p10 = scmp.lt.u32.totalorder %s4979_s25, %s5524_s5 }
 0x17a   : > { %p4294_p8 = scmp.ne.s32.totalorder %s4979_s25, %s4293_s10  ;;  %p4300_p1 = scmp.lt.u32.totalorder %s4298_s11, %s4293_s10 }
 0x17b   : > { %p4302_p4 = scmp.lt.u32.totalorder %s4293_s10, %s4979_s25 }
 0x17c   : > { %p4296_p11 = pnand %p4294_p8, %p5511_p7  ;;  %p4301_p9 = por %p4300_p1, %p4299_p10 }
 0x17e   : > { %p4297_p3 = pneg %p4296_p11  ;;  %p4303_p6 = por %p4302_p4, %p4301_p9 }
 0x180   : > { %p4304_p5 = pnand %p4303_p6, %p4297_p3 }
 0x182   : > { %4307 = shalt.err (!%p4304_p5)
}
 0x183   : > { %s4308_s18 = scalar_lea.vmem %s671_s3, 16  ;;  %s4449_s13 = smov [#allocation23]  }
 0x184   : > { %p4309_p12 = scmp.ne.s32.totalorder %s671_s3, %s4308_s18  ;;  %s4313_s7 = sshll.u32 %s4449_s13, 4  ;;  %s4314_s7 = int_to_ptr.vmem [resolvable:$false] %s4313_s7 }
 0x185   : > { %s4315_s8 = scalar_lea.vmem %s4314_s7, 32  ;;  %p4316_p8 = scmp.lt.s32.totalorder %s671_s3, %s4314_s7 }
 0x186   : > { %p4311_p13 = pnand %p4309_p12, %p5511_p7  ;;  %p4317_p11 = scmp.lt.s32.totalorder %s4315_s8, %s4308_s18 }
 0x188   : > { %p4312_p0 = pneg %p4311_p13  ;;  %p4318_p2 = por %p4317_p11, %p4316_p8 }
 0x18a   : > { %p4319_p1 = pnand %p4318_p2, %p4312_p0 }
 0x18c   : > { %4322 = shalt.err (!%p4319_p1)
}
 0x18d   : > { %p5525_p10 = scmp.ne.s32.totalorder %s5497_s14, 0  ;;  %s5526_s20 = scalar_lea.sflag [#allocation22], %s4570_s17 }
 0x18e   : > { %p5527_p3 = scmp.ne.s32.totalorder %s5509_s22, 0 }
 0x18f   : > { %3703 = dma.hbm_to_vmem [thread:$0]  (!%p5525_p10), %s4979_s25, 16, %s671_s3, %s5526_s20  }
 0x190   : > { %679 = sbr.rel (%p5527_p3) target bundleno = 4552 (0x11c8), region = 72  ;;  %p5528_p7 = scmp.eq.s32.totalorder (!%p5527_p3), %s4796_s1, 0 }
 0x197   : > { %4374 = dma.done.wait (%p5528_p7), [#allocation4], 256   ;;  %p5529_p9 = pmov %p5528_p7 }
 0x198   : > { %s5008_s19 = sand.u32 1, %s4796_s1   ;;  %s5011_s14 = sand.u32 1, %s4411_s26  }
 0x199   : > { %4376 = vsyncadd (%p5529_p9), [#allocation4], 4294967040  ;;  %s3629_s17 = smul.u32 192, %s5011_s14  ;;  %s686_s15 = scalar_lea.sflag [#allocation7], %s5008_s19 }
 0x19a   : > { %p5530_p2 = scmp.ne.s32.totalorder %s5508_s12, 0 }
 0x19b   : > { %s5015_s25 = scalar_lea.vmem [#allocation6], %s3629_s17 }
 0x19c   : > { %4378 = dma.done.wait (%p5530_p2), %s686_s15, 3120  }
 0x19d   : > { %4380 = vsyncadd (%p5530_p2), %s686_s15, 4294964176  ;;  %s3630_s22 = smul.u32 3, %s5011_s14  ;;  %s3252_s9 = sshll.u32 %s5011_s14, 6 }
 0x19e   : > { %s704_s10 = scalar_lea.sflag [#allocation10], %s5008_s19  ;;  %s5026_s27 = scalar_lea.vmem [#allocation9], %s3252_s9 }
 0x19f   : > { %s5023_s3 = scalar_lea.vmem [#allocation8], %s3630_s22 }
 0x1a0   : > { %4382 = dma.done.wait (%p5530_p2), %s704_s10, 1040  }
 0x1a1   : > { %4384 = vsyncadd (%p5530_p2), %s704_s10, 4294966256  ;;  %s715_s23 = scalar_lea.vmem [#allocation11], %s5011_s14  ;;  %s721_s11 = scalar_lea.sflag [#allocation13], %s5008_s19 }
 0x1a2   : > { %s723_s21 = scalar_lea.vmem [#allocation12], %s5011_s14 }
 0x1a3   : > { %4386 = dma.done.wait (%p5530_p2), %s721_s11, 32  }
 0x1a4   : > { %4388 = vsyncadd (%p5530_p2), %s721_s11, 4294967264  ;;  %s3253_s28 = sshll.u32 %s5011_s14, 8  ;;  %s731_s18 = scalar_lea.vmem [#allocation14], %s5011_s14 }
 0x1a5   : > { %s737_s13 = scalar_lea.sflag [#allocation16], %s5008_s19  ;;  %s5042_s7 = scalar_lea.vmem [#allocation15], %s3253_s28 }
 0x1a6   : > { %4390 = dma.done.wait (%p5530_p2), %s737_s13, 4160  }
 0x1a7   : > { %4392 = vsyncadd (%p5530_p2), %s737_s13, 4294963136  ;;  %s3254_s8 = sshll.u32 %s5011_s14, 2  ;;  %s755_s17 = scalar_lea.sflag [#allocation19], %s5008_s19 }
 0x1a8   : > { %s5049_s20 = scalar_lea.vmem [#allocation17], %s3254_s8  ;;  %s5052_s15 = scalar_lea.vmem [#allocation18], %s3253_s28 }
 0x1a9   : > { %4394 = dma.done.wait (%p5530_p2), %s755_s17, 4112  }
 0x1aa   : > { %4396 = vsyncadd (%p5530_p2), %s755_s17, 4294963184  ;;  %s766_s22 = scalar_lea.vmem [#allocation20], %s5011_s14  ;;  %s772_s9 = scalar_lea.sflag [#allocation22], %s5008_s19 }
 0x1ab   : > { %s774_s10 = scalar_lea.vmem [#allocation21], %s5011_s14 }
 0x1ac   : > { %4398 = dma.done.wait (%p5530_p2), %s772_s9, 32  }
 0x1ad   : > { %4400 = vsyncadd (%p5530_p2), %s772_s9, 4294967264  ;;  %s782_s11 = scalar_lea.vmem [#allocation23], %s5011_s14  ;;  %s5531_s28 = sld [smem:[#allocation34_spill]] }
 0x1b3   : > { %p3256_p4 = scmp.ne.s32.totalorder %s5531_s28, 0 }
 0x1b4   : > { %v876_v0 = vld [vmem:[#allocation3] sm:$0xff] (!%p3256_p4)  ;;  %v877_v1 = vld [vmem:[#allocation3 + $0x8] sm:$0xff] (!%p3256_p4) }
 0x1b5   : > { %875 = sbr.rel (%p3256_p4) target bundleno = 444 (0x1bc), region = 128  ;;  %878 = vst [vmem:[#allocation24] sm:$0xff] (!%p3256_p4), %v876_v0  ;;  %879 = vst [vmem:[#allocation24 + $0x8] sm:$0xff] (!%p3256_p4), %v877_v1 }
 0x1bc PF: > { %v3775_v2 = vld [vmem:[%s5015_s25 + $0x4] ss:$12 sps:$4 sm:$0xff]   ;;  %v3777_v3 = vld [vmem:[%s5015_s25] ss:$12 sps:$4 sm:$0xff]   ;;  %v4450_v4 = vmov 0   ;;  %v4451_v5 = vmov 0.0   ;;  %v917_v31 = vlaneseq }
 0x1bd   : > { %1092 = vmatprep.mubr.bf16.mxu0 %v4450_v4  ;;  %3489 = vmatprep.subr.bf16.mxu1 %v4451_v5  ;;  %v3778_v6 = vld [vmem:[%s5015_s25 + $0x1c] ss:$12 sps:$4 sm:$0xff]   ;;  %v3780_v7 = vld [vmem:[%s5015_s25 + $0x18] ss:$12 sps:$4 sm:$0xff]   ;;  %v3781_v8 = vld [vmem:[%s5015_s25 + $0x34] ss:$12 sps:$4 sm:$0xff]  }
 0x1be   : > { %1060 = vmatprep.subr.bf16.mxu0 %v3775_v2  ;;  %v3783_v9 = vld [vmem:[%s5015_s25 + $0x30] ss:$12 sps:$4 sm:$0xff]   ;;  %v3784_v10 = vld [vmem:[%s5015_s25 + $0x4c] ss:$12 sps:$4 sm:$0xff]   ;;  %v3786_v11 = vld [vmem:[%s5015_s25 + $0x48] ss:$12 sps:$4 sm:$0xff]  }
 0x1bf   : > { %1061 = vmatpush1.bf16.msra.mxu0 %v3777_v3  ;;  %v3787_v12 = vld [vmem:[%s5015_s25 + $0x64] ss:$12 sps:$4 sm:$0xff]   ;;  %v3799_v13 = vld [vmem:[%s5015_s25 + $0x8] ss:$12 sps:$4 sm:$0xff]   ;;  %v3800_v14 = vld [vmem:[%s5015_s25 + $0x20] ss:$12 sps:$4 sm:$0xff]  }
 0x1c0   : > { %1062 = vmatprep.subr.bf16.mxu0 %v3778_v6  ;;  %3490 = vmatpush3.bf16.msra.mxu1 %v3799_v13  ;;  %v3789_v15 = vld [vmem:[%s5015_s25 + $0x60] ss:$12 sps:$4 sm:$0xff]   ;;  %v3790_v16 = vld [vmem:[%s5015_s25 + $0x7c] ss:$12 sps:$4 sm:$0xff]   ;;  %v3801_v17 = vld [vmem:[%s5015_s25 + $0x38] ss:$12 sps:$4 sm:$0xff]  }
 0x1c1   : > { %3491 = vmatprep.subr.bf16.mxu1 %v4451_v5  ;;  %v3792_v18 = vld [vmem:[%s5015_s25 + $0x78] ss:$12 sps:$4 sm:$0xff]   ;;  %v3793_v19 = vld [vmem:[%s5015_s25 + $0x94] ss:$12 sps:$4 sm:$0xff]   ;;  %v3802_v20 = vld [vmem:[%s5015_s25 + $0x50] ss:$12 sps:$4 sm:$0xff]  }
 0x1c2   : > { %v3795_v21 = vld [vmem:[%s5015_s25 + $0x90] ss:$12 sps:$4 sm:$0xff]   ;;  %v3796_v22 = vld [vmem:[%s5015_s25 + $0xac] ss:$12 sps:$4 sm:$0xff]   ;;  %v3803_v23 = vld [vmem:[%s5015_s25 + $0x68] ss:$12 sps:$4 sm:$0xff]  }
 0x1c3   : > { %1063 = vmatpush1.bf16.msra.mxu0 %v3780_v7  ;;  %v3798_v24 = vld [vmem:[%s5015_s25 + $0xa8] ss:$12 sps:$4 sm:$0xff]   ;;  %v5093_v25 = vld [vmem:[#allocation24] sm:$0xff]  ;;  %vm4452_vm0 = vmmov 0   ;;  %v5114_v32 = vshrl.u32 %v917_v31, 7  ;;  %vm1162_vm1 = vcmask 261120  }
 0x1c4   : > { %1064 = vmatprep.subr.bf16.mxu0 %v3781_v8  ;;  %3492 = vmatpush3.bf16.msra.mxu1 %v3800_v14  ;;  %v5095_v26 = vld [vmem:[#allocation24 + $0x8] sm:$0xff]  ;;  %v3806_v30 = vld [vmem:[%s5015_s25 + $0xb0] ss:$12 sps:$4 sm:$0xff]   ;;  %vm1285_vm2 = vcmask 1043456   ;;  %vm1257_vm3 = vcmask 64512   ;;  %s4453_s12 = smov 96  }
 0x1c5   : > { %3493 = vmatprep.subr.bf16.mxu1 %v4451_v5  ;;  %v3804_v27 = vld [vmem:[%s5015_s25 + $0x80] ss:$12 sps:$4 sm:$0xff]   ;;  %v882_v28 = vpack.c.bf16 %v5095_v26, %v5093_v25  ;;  %v3805_v29 = vld [vmem:[%s5015_s25 + $0x98] ss:$12 sps:$4 sm:$0xff]   ;;  %3505 = vmatprep.mubr.msk.bf16.mxu1 %vm4452_vm0, %v4451_v5  ;;  %v923_v33 = vsub.s32 1, %v5114_v32  ;;  %v919_v36 = vsub.s32 0, %v5114_v32 }
 0x1c6   : > { %v915_v34 = vld [vmem:[%s5023_s3] sm:$0x7]  ;;  %v927_v52 = vsub.s32 2, %v5114_v32  ;;  %s4454_s19 = smov 64   ;;  %s4455_s25 = smov 32   ;;  %vm1604_vm4 = vcmask 523520  }
 0x1c7   : > { %1065 = vmatpush1.bf16.msra.mxu0 %v3783_v9  ;;  %v924_v35 = vrot.slane %v915_v34, %v923_v33  ;;  %v920_v42 = vrot.slane %v915_v34, %v919_v36  ;;  %vm1833_vm5 = vcmask 785920   ;;  %vm2062_vm6 = vcmask 1048320   ;;  %s4456_s3 = smov [#allocation24]   ;;  %p3707_p6 = scmp.eq.s32.totalorder %s4796_s1, 1 }
 0x1c8   : > { %1066 = vmatprep.subr.bf16.mxu0 %v3784_v10  ;;  %3494 = vmatpush3.bf16.msra.mxu1 %v3801_v17  ;;  %v928_v53 = vrot.slane %v915_v34, %v927_v52 }
 0x1c9   : > { %3495 = vmatprep.subr.bf16.mxu1 %v4451_v5 }
 0x1cb   : > { %1067 = vmatpush1.bf16.msra.mxu0 %v3786_v11 }
 0x1cc   : > { %1068 = vmatprep.subr.bf16.mxu0 %v3787_v12  ;;  %3496 = vmatpush3.bf16.msra.mxu1 %v3802_v20 }
 0x1cd   : > { %3497 = vmatprep.subr.bf16.mxu1 %v4451_v5 }
 0x1cf   : > { %1069 = vmatpush1.bf16.msra.mxu0 %v3789_v15 }
 0x1d0   : > { %1070 = vmatprep.subr.bf16.mxu0 %v3790_v16  ;;  %3498 = vmatpush3.bf16.msra.mxu1 %v3803_v23 }
 0x1d1   : > { %3499 = vmatprep.subr.bf16.mxu1 %v4451_v5 }
 0x1d3   : > { %1071 = vmatpush1.bf16.msra.mxu0 %v3792_v18 }
 0x1d4   : > { %1072 = vmatprep.subr.bf16.mxu0 %v3793_v19  ;;  %3500 = vmatpush3.bf16.msra.mxu1 %v3804_v27 }
 0x1d5   : > { %3501 = vmatprep.subr.bf16.mxu1 %v4451_v5 }
 0x1d7   : > { %1073 = vmatpush1.bf16.msra.mxu0 %v3795_v21 }
 0x1d8   : > { %1074 = vmatprep.subr.bf16.mxu0 %v3796_v22  ;;  %3502 = vmatpush3.bf16.msra.mxu1 %v3805_v29 }
 0x1d9   : > { %3503 = vmatprep.subr.bf16.mxu1 %v4451_v5 }
 0x1db   : > { %1075 = vmatpush1.bf16.msra.mxu0 %v3798_v24 }
 0x1dc   : > { %3533 = vmatprep.subr.bf16.mxu0 %v4451_v5  ;;  %3504 = vmatpush3.bf16.msra.mxu1 %v3806_v30 }
 0x1dd   : > { %3509 = vmatprep.subr.bf16.mxu1 %v4451_v5 }
 0x1de   : > { %1093 = vmatmul.mubr.bf16.vlgmr.msra.gmra.mrb[0].mxu0 %v882_v28 }
 0x1df   : > { %3535 = vmatprep.mubr.msk.bf16.mxu0 %vm4452_vm0, %v4451_v5  ;;  %3506 = vmatmul.mubr.bf16.vlgmr.msra.gmra.mrb[0].mxu1 %v882_v28 }
 0x1e0   : > { %3511 = vmatprep.mubr.msk.bf16.mxu1 %vm4452_vm0, %v4451_v5 }
 0x2b1   : > { %v1094_v37 = vpop.f32.mrb[0].mxu0 }
 0x2b2   : > { %v1096_v38 = vpop.f32.mrb[1].mxu0  ;;  %v1095_v46 = vadd.f32 %v1094_v37, %v920_v42  ;;  %v1137_v54 = vpop.f32.mrb[0].mxu1 }
 0x2b3   : > { %v1097_v39 = vadd.f32 %v1096_v38, %v924_v35  ;;  %v1098_v40 = vpop.f32.mrb[2].mxu0  ;;  %v1138_v55 = vadd.f32 %v1137_v54, %v928_v53  ;;  %v3507_v56 = vpop.f32.mrb[1].mxu1 }
 0x2b4   : > { %v1100_v41 = vpop.f32.mrb[3].mxu0  ;;  %v5130_v48 = vpack.c.bf16 %v1095_v46, %v1095_v46  ;;  %v1099_v50 = vadd.f32 %v1098_v40, %v920_v42  ;;  %v1140_v57 = vpop.f32.mrb[2].mxu1 }
 0x2b5   : > { %v5123_v43 = vpack.c.bf16 %v1097_v39, %v1097_v39  ;;  %v1101_v44 = vadd.f32 %v1100_v41, %v924_v35  ;;  %v5148_v58 = vpack.c.bf16 %v1138_v55, %v1138_v55  ;;  %v1141_v59 = vadd.f32 %v1140_v57, %v928_v53  ;;  %v3508_v60 = vpop.f32.mrb[3].mxu1 }
 0x2b6   : > { %v5139_v51 = vpack.c.bf16 %v1099_v50, %v1099_v50 }
 0x2b7   : > { %v1167_v45 = vsel %vm1162_vm1, %v5123_v43, 0  ;;  %v5128_v47 = vpack.c.bf16 %v1101_v44, %v1101_v44  ;;  %v1287_v61 = vsel %vm1285_vm2, %v5148_v58, 0  ;;  %v5167_v28 = vpack.c.bf16 %v1141_v59, %v1141_v59 }
 0x2b8   : > { %3510 = vmatpush3.bf16.xpose.msra.mxu1 %v1167_v45 }
 0x2b9   : > { %3515 = vmatprep.subr.bf16.mxu1 %v4451_v5  ;;  %v1213_v49 = vsel %vm1162_vm1, %v5128_v47, 0  ;;  %v1333_v31 = vsel %vm1285_vm2, %v5167_v28, 0 }
 0x2bf   : > { %3512 = vmatmul.mubr.msk.bf16.vlgmr.msra.gmra.mrb[4].mxu1 %vm1162_vm1, %v5130_v48 }
 0x2c0   : > { %3516 = vmatpush3.bf16.xpose.msra.mxu1 %v1213_v49  ;;  %3517 = vmatprep.mubr.msk.bf16.mxu1 %vm4452_vm0, %v4451_v5 }
 0x2c1   : > { %3521 = vmatprep.subr.bf16.mxu1 %v4451_v5 }
 0x2c7   : > { %3518 = vmatmul.mubr.msk.bf16.vlgmr.msra.gmra.mrb[8].mxu1 %vm1162_vm1, %v5139_v51 }
 0x2c8   : > { %3523 = vmatprep.mubr.msk.bf16.mxu1 %vm4452_vm0, %v4451_v5  ;;  %3522 = vmatpush3.bf16.msra.mxu1 %v1287_v61 }
 0x2c9   : > { %3527 = vmatprep.subr.bf16.mxu1 %v4451_v5 }
 0x392   : > { %v1203_v62 = vpop.f32.mrb[4].mxu1 }
 0x393   : > { %v1255_v63 = vmul.f32 0.17677669, %v1203_v62  ;;  %v3513_v0 = vpop.f32.mrb[5].mxu1 }
 0x394   : > { %v1206_v1 = vpop.f32.mrb[6].mxu1 }
 0x395   : > { %v3514_v2 = vpop.f32.mrb[7].mxu1  ;;  %v1258_v3 = vsel %vm1257_vm3, %v1255_v63, -inf }
 0x396   : > { %1259 = vmax.xlane.f32.xlu0 %v1258_v3 }
 0x39a   : > { %v1249_v6 = vpop.f32.mrb[8].mxu1 }
 0x39b   : > { %v1256_v7 = vmul.f32 0.17677669, %v1249_v6  ;;  %v3519_v8 = vpop.f32.mrb[9].mxu1 }
 0x39c   : > { %v1252_v9 = vpop.f32.mrb[10].mxu1 }
 0x39d   : > { %v3520_v10 = vpop.f32.mrb[11].mxu1  ;;  %v1261_v11 = vsel %vm1257_vm3, %v1256_v7, -inf }
 0x39e   : > { %1262 = vmax.xlane.f32.xlu0 %v1261_v11 }
 0x3b4   : > { %1379 = vrot.lane.b32.xlu0 %v5123_v43, %s4453_s12 }
 0x423   : > { %v1260_v12 = vpop.xlane.xlu0 %1259 }
 0x424   : > { %v1264_v13 = vsub.f32 %v1255_v63, %v1260_v12 }
 0x426   : > { %v1266_v14 = vmul.f32 1.442695, %v1264_v13 }
 0x428   : > { %3895 = vpow2.f32 %v1266_v14 }
 0x42b   : > { %v1263_v15 = vpop.xlane.xlu0 %1262 }
 0x42c   : > { %v1265_v20 = vsub.f32 %v1256_v7, %v1263_v15 }
 0x42e   : > { %v1268_v21 = vmul.f32 1.442695, %v1265_v20 }
 0x42f   : > { %v1380_v16 = vpop.permute.xlu0 %1379 }
 0x430   : > { %v1385_v17 = vsel %vm1162_vm1, %v1380_v16, 0  ;;  %3897 = vpow2.f32 %v1268_v21 }
 0x431   : > { %3534 = vmatpush3.bf16.xpose.msra.mxu0 %v1385_v17 }
 0x432   : > { %v3896_v18 = vpop.eup %3895  ;;  %3545 = vmatprep.subr.bf16.mxu0 %v4451_v5 }
 0x433   : > { %v1270_v19 = vsel %vm1257_vm3, %v3896_v18, 0.0 }
 0x434   : > { %1271 = vadd.xlane.f32.xlu1 %v1270_v19 }
 0x43a   : > { %v3898_v22 = vpop.eup %3897 }
 0x43b   : > { %v1273_v23 = vsel %vm1257_vm3, %v3898_v22, 0.0 }
 0x445   : > { %1429 = vrot.lane.b32.xlu1 %v5128_v47, %s4453_s12 }
 0x469   : > { %1274 = vadd.xlane.f32.xlu1 %v1273_v23 }
 0x47a   : > { %1377 = vrot.lane.b32.xlu1 %v5130_v48, %s4453_s12 }
 0x47e   : > { %1427 = vrot.lane.b32.xlu1 %v5139_v51, %s4453_s12 }
 0x4c1   : > { %v1272_v24 = vpop.xlane.xlu1 %1271 }
 0x4c2   : > { %3899 = vrcp.f32 %v1272_v24 }
 0x4c5   : > { %v1430_v34 = vpop.permute.xlu1 %1429 }
 0x4c6   : > { %v1435_v41 = vsel %vm1162_vm1, %v1430_v34, 0 }
 0x4cc   : > { %v3900_v27 = vpop.eup %3899 }
 0x4cd   : > { %v1278_v29 = vmul.f32 %v3900_v27, %v3896_v18 }
 0x4cf   : > { %v1280_v30 = vpack.c.bf16 %v1278_v29, %v1278_v29 }
 0x4d1   : > { %3524 = vmatmul.mubr.msk.bf16.vlgmr.msra.gmra.mrb[12].mxu1 %vm1257_vm3, %v1280_v30 }
 0x4d2   : > { %3528 = vmatpush3.bf16.msra.mxu1 %v1333_v31  ;;  %3529 = vmatprep.mubr.msk.bf16.mxu1 %vm4452_vm0, %v4451_v5 }
 0x4d3   : > { %3539 = vmatprep.subr.bf16.mxu1 %v4451_v5 }
 0x4f6   : > { %v1275_v35 = vpop.xlane.xlu1 %1274 }
 0x4f7   : > { %3901 = vrcp.f32 %v1275_v35 }
 0x4fa   : > { %v1378_v37 = vpop.permute.xlu1 %1377 }
 0x4fb   : > { %3536 = vmatmul.mubr.msk.bf16.vlgmr.msra.gmra.mrb[4].mxu0 %vm1162_vm1, %v1378_v37 }
 0x4fc   : > { %3547 = vmatprep.mubr.msk.bf16.mxu0 %vm4452_vm0, %v4451_v5 }
 0x4fe   : > { %v1428_v42 = vpop.permute.xlu1 %1427 }
 0x501   : > { %v3902_v38 = vpop.eup %3901 }
 0x502   : > { %v1279_v39 = vmul.f32 %v3902_v38, %v3898_v22 }
 0x504   : > { %v1281_v40 = vpack.c.bf16 %v1279_v39, %v1279_v39 }
 0x506   : > { %3530 = vmatmul.mubr.msk.bf16.vlgmr.msra.gmra.mrb[16].mxu1 %vm1257_vm3, %v1281_v40 }
 0x507   : > { %3540 = vmatpush3.bf16.xpose.msra.mxu1 %v1435_v41  ;;  %3541 = vmatprep.mubr.msk.bf16.mxu1 %vm4452_vm0, %v4451_v5 }
 0x508   : > { %3551 = vmatprep.subr.bf16.mxu1 %v4451_v5 }
 0x50e   : > { %3542 = vmatmul.mubr.msk.bf16.vlgmr.msra.gmra.mrb[20].mxu1 %vm1162_vm1, %v1428_v42 }
 0x50f   : > { %3553 = vmatprep.mubr.msk.bf16.mxu1 %vm4452_vm0, %v4451_v5 }
 0x5a4   : > { %v1323_v44 = vpop.f32.mrb[12].mxu1 }
 0x5a5   : > { %v3525_v45 = vpop.f32.mrb[13].mxu1 }
 0x5a6   : > { %v1326_v46 = vpop.f32.mrb[14].mxu1 }
 0x5a7   : > { %v3526_v49 = vpop.f32.mrb[15].mxu1 }
 0x5ce   : > { %v1421_v50 = vpop.f32.mrb[4].mxu0 }
 0x5cf   : > { %v1477_v53 = vmul.f32 0.17677669, %v1421_v50  ;;  %v3537_v54 = vpop.f32.mrb[5].mxu0 }
 0x5d0   : > { %v1424_v55 = vpop.f32.mrb[6].mxu0 }
 0x5d1   : > { %v3538_v56 = vpop.f32.mrb[7].mxu0  ;;  %v1479_v57 = vsel %vm1257_vm3, %v1477_v53, -inf }
 0x5d2   : > { %1480 = vmax.xlane.f32.xlu0 %v1479_v57 }
 0x5d9   : > { %v1369_v59 = vpop.f32.mrb[16].mxu1 }
 0x5da   : > { %v1375_v60 = vpack.c.bf16 %v1369_v59, %v1323_v44  ;;  %v3531_v61 = vpop.f32.mrb[17].mxu1 }
 0x5db   : > { %v1372_v62 = vpop.f32.mrb[18].mxu1 }
 0x5dc   : > { %1376 = vst.msk [vmem:[#allocation2] sm:$0xff] %vm1162_vm1, %v1375_v60  ;;  %v3532_v63 = vpop.f32.mrb[19].mxu1 }
 0x5e1   : > { %v1471_v0 = vpop.f32.mrb[20].mxu1 }
 0x5e2   : > { %v1478_v1 = vmul.f32 0.17677669, %v1471_v0  ;;  %v3543_v2 = vpop.f32.mrb[21].mxu1 }
 0x5e3   : > { %v1474_v3 = vpop.f32.mrb[22].mxu1 }
 0x5e4   : > { %v3544_v6 = vpop.f32.mrb[23].mxu1  ;;  %v1482_v7 = vsel %vm1257_vm3, %v1478_v1, -inf }
 0x5e5   : > { %1483 = vmax.xlane.f32.xlu1 %v1482_v7 }
 0x5f6   : > { %1551 = vrot.lane.b32.xlu1 %v5167_v28, %s4453_s12 }
 0x5fa   : > { %1608 = vrot.lane.b32.xlu1 %v5123_v43, %s4454_s19 }
 0x5fe   : > { %1658 = vrot.lane.b32.xlu1 %v5128_v47, %s4454_s19 }
 0x602   : > { %1656 = vrot.lane.b32.xlu1 %v5139_v51, %s4454_s19 }
 0x65f   : > { %v1481_v8 = vpop.xlane.xlu0 %1480 }
 0x660   : > { %v1485_v9 = vsub.f32 %v1477_v53, %v1481_v8 }
 0x662   : > { %v1487_v10 = vmul.f32 1.442695, %v1485_v9 }
 0x664   : > { %3903 = vpow2.f32 %v1487_v10 }
 0x66e   : > { %v3904_v11 = vpop.eup %3903 }
 0x66f   : > { %v1491_v12 = vsel %vm1257_vm3, %v3904_v11, 0.0 }
 0x670   : > { %1492 = vadd.xlane.f32.xlu0 %v1491_v12 }
 0x672   : > { %v1484_v13 = vpop.xlane.xlu1 %1483 }
 0x673   : > { %v1486_v14 = vsub.f32 %v1478_v1, %v1484_v13 }
 0x675   : > { %v1489_v15 = vmul.f32 1.442695, %v1486_v14 }
 0x676   : > { %v1552_v16 = vpop.permute.xlu1 %1551 }
 0x677   : > { %3905 = vpow2.f32 %v1489_v15  ;;  %v1557_v17 = vsel %vm1285_vm2, %v1552_v16, 0 }
 0x678   : > { %3552 = vmatpush3.bf16.msra.mxu1 %v1557_v17 }
 0x679   : > { %3563 = vmatprep.subr.bf16.mxu1 %v4451_v5 }
 0x67a   : > { %v1609_v29 = vpop.permute.xlu1 %1608 }
 0x67b   : > { %v1614_v37 = vsel %vm1162_vm1, %v1609_v29, 0 }
 0x67e   : > { %v1659_v35 = vpop.permute.xlu1 %1658 }
 0x67f   : > { %v1664_v39 = vsel %vm1162_vm1, %v1659_v35, 0 }
 0x681   : > { %v3906_v18 = vpop.eup %3905 }
 0x682   : > { %v1494_v19 = vsel %vm1257_vm3, %v3906_v18, 0.0  ;;  %v1657_v41 = vpop.permute.xlu1 %1656 }
 0x683   : > { %1495 = vadd.xlane.f32.xlu0 %v1494_v19 }
 0x699   : > { %1503 = vrot.lane.b32.xlu0 %v5148_v58, %s4453_s12 }
 0x69d   : > { %1606 = vrot.lane.b32.xlu0 %v5130_v48, %s4454_s19 }
 0x6fd   : > { %v1493_v20 = vpop.xlane.xlu0 %1492 }
 0x6fe   : > { %3907 = vrcp.f32 %v1493_v20 }
 0x708   : > { %v3908_v21 = vpop.eup %3907 }
 0x709   : > { %v1499_v23 = vmul.f32 %v3908_v21, %v3904_v11 }
 0x70b   : > { %v1501_v30 = vpack.c.bf16 %v1499_v23, %v1499_v23 }
 0x710   : > { %v1496_v22 = vpop.xlane.xlu0 %1495 }
 0x711   : > { %3909 = vrcp.f32 %v1496_v22 }
 0x714   : > { %v1504_v24 = vpop.permute.xlu0 %1503 }
 0x715   : > { %v1509_v27 = vsel %vm1285_vm2, %v1504_v24, 0 }
 0x716   : > { %3546 = vmatpush3.bf16.msra.mxu0 %v1509_v27 }
 0x717   : > { %3557 = vmatprep.subr.bf16.mxu0 %v4451_v5 }
 0x718   : > { %v1607_v40 = vpop.permute.xlu0 %1606 }
 0x719   : > { %3548 = vmatmul.mubr.msk.bf16.vlgmr.msra.gmra.mrb[8].mxu0 %vm1257_vm3, %v1501_v30 }
 0x71a   : > { %3559 = vmatprep.mubr.msk.bf16.mxu0 %vm4452_vm0, %v4451_v5 }
 0x71b   : > { %v3910_v31 = vpop.eup %3909 }
 0x71c   : > { %v1500_v34 = vmul.f32 %v3910_v31, %v3906_v18 }
 0x71e   : > { %v1502_v38 = vpack.c.bf16 %v1500_v34, %v1500_v34 }
 0x71f   : > { %3558 = vmatpush3.bf16.xpose.msra.mxu0 %v1614_v37 }
 0x720   : > { %3554 = vmatmul.mubr.msk.bf16.vlgmr.msra.gmra.mrb[24].mxu1 %vm1257_vm3, %v1502_v38  ;;  %3569 = vmatprep.subr.bf16.mxu0 %v4451_v5 }
 0x721   : > { %3564 = vmatpush3.bf16.xpose.msra.mxu1 %v1664_v39  ;;  %3565 = vmatprep.mubr.msk.bf16.mxu1 %vm4452_vm0, %v4451_v5 }
 0x722   : > { %3575 = vmatprep.subr.bf16.mxu1 %v4451_v5 }
 0x726   : > { %3560 = vmatmul.mubr.msk.bf16.vlgmr.msra.gmra.mrb[12].mxu0 %vm1162_vm1, %v1607_v40 }
 0x727   : > { %3571 = vmatprep.mubr.msk.bf16.mxu0 %vm4452_vm0, %v4451_v5 }
 0x728   : > { %3566 = vmatmul.mubr.msk.bf16.vlgmr.msra.gmra.mrb[28].mxu1 %vm1162_vm1, %v1657_v41 }
 0x729   : > { %3577 = vmatprep.mubr.msk.bf16.mxu1 %vm4452_vm0, %v4451_v5 }
 0x7ec   : > { %v5223_v42 = vpop.f32.mrb[8].mxu0 }
 0x7ed   : > { %v3549_v44 = vpop.f32.mrb[9].mxu0 }
 0x7ee   : > { %v1548_v45 = vpop.f32.mrb[10].mxu0 }
 0x7ef   : > { %v3550_v46 = vpop.f32.mrb[11].mxu0 }
 0x7f3   : > { %v5225_v49 = vpop.f32.mrb[24].mxu1 }
 0x7f4   : > { %v1599_v50 = vpack.c.bf16 %v5225_v49, %v5223_v42  ;;  %v3555_v53 = vpop.f32.mrb[25].mxu1 }
 0x7f5   : > { %v1596_v54 = vpop.f32.mrb[26].mxu1 }
 0x7f6   : > { %v3556_v55 = vpop.f32.mrb[27].mxu1 }
 0x7f9   : > { %v1650_v56 = vpop.f32.mrb[12].mxu0 }
 0x7fa   : > { %v1706_v57 = vmul.f32 0.17677669, %v1650_v56  ;;  %v3561_v59 = vpop.f32.mrb[13].mxu0 }
 0x7fb   : > { %v1653_v60 = vpop.f32.mrb[14].mxu0  ;;  %v1700_v61 = vpop.f32.mrb[28].mxu1 }
 0x7fc   : > { %v1707_v62 = vmul.f32 0.17677669, %v1700_v61  ;;  %v3562_v63 = vpop.f32.mrb[15].mxu0  ;;  %v3567_v0 = vpop.f32.mrb[29].mxu1  ;;  %v1708_v1 = vsel %vm1257_vm3, %v1706_v57, -inf }
 0x7fd   : > { %1709 = vmax.xlane.f32.xlu0 %v1708_v1  ;;  %v1703_v2 = vpop.f32.mrb[30].mxu1 }
 0x7fe   : > { %v3568_v3 = vpop.f32.mrb[31].mxu1  ;;  %v1711_v6 = vsel %vm1257_vm3, %v1707_v62, -inf }
 0x7ff   : > { %1712 = vmax.xlane.f32.xlu1 %v1711_v6 }
 0x810   : > { %1780 = vrot.lane.b32.xlu1 %v5167_v28, %s4454_s19 }
 0x814   : > { %1837 = vrot.lane.b32.xlu1 %v5123_v43, %s4455_s25 }
 0x818   : > { %1887 = vrot.lane.b32.xlu1 %v5128_v47, %s4455_s25 }
 0x81c   : > { %1885 = vrot.lane.b32.xlu1 %v5139_v51, %s4455_s25 }
 0x88a   : > { %v1710_v7 = vpop.xlane.xlu0 %1709 }
 0x88b   : > { %v1714_v8 = vsub.f32 %v1706_v57, %v1710_v7 }
 0x88c   : > { %v1713_v9 = vpop.xlane.xlu1 %1712 }
 0x88d   : > { %v1716_v10 = vmul.f32 1.442695, %v1714_v8  ;;  %v1715_v11 = vsub.f32 %v1707_v62, %v1713_v9 }
 0x88f   : > { %3911 = vpow2.f32 %v1716_v10  ;;  %v1718_v12 = vmul.f32 1.442695, %v1715_v11 }
 0x890   : > { %v1781_v13 = vpop.permute.xlu1 %1780 }
 0x891   : > { %3913 = vpow2.f32 %v1718_v12  ;;  %v1786_v14 = vsel %vm1285_vm2, %v1781_v13, 0 }
 0x892   : > { %3576 = vmatpush3.bf16.msra.mxu1 %v1786_v14 }
 0x893   : > { %3587 = vmatprep.subr.bf16.mxu1 %v4451_v5 }
 0x894   : > { %v1838_v21 = vpop.permute.xlu1 %1837 }
 0x898   : > { %v1888_v29 = vpop.permute.xlu1 %1887 }
 0x899   : > { %v3912_v43 = vpop.eup %3911  ;;  %v1893_v31 = vsel %vm1162_vm1, %v1888_v29, 0  ;;  %v3812_v29 = vld [vmem:[%s5026_s27 + $0x28] sm:$0xff]  }
 0x89a   : > { %v1720_v47 = vsel %vm1257_vm3, %v3912_v43, 0.0 }
 0x89b   : > { %v3914_v15 = vpop.eup %3913  ;;  %1721 = vadd.xlane.f32.xlu0 %v1720_v47 }
 0x89c   : > { %v1723_v51 = vsel %vm1257_vm3, %v3914_v15, 0.0  ;;  %v1886_v35 = vpop.permute.xlu1 %1885 }
 0x89f   : > { %1724 = vadd.xlane.f32.xlu0 %v1723_v51 }
 0x8b5   : > { %1732 = vrot.lane.b32.xlu0 %v5148_v58, %s4454_s19 }
 0x8b9   : > { %1835 = vrot.lane.b32.xlu0 %v5130_v48, %s4455_s25  ;;  %v1843_v48 = vsel %vm1162_vm1, %v1838_v21, 0  ;;  %v3807_v21 = vld [vmem:[%s5026_s27] sm:$0xff]  }
 0x928   : > { %v1722_v16 = vpop.xlane.xlu0 %1721 }
 0x929   : > { %3915 = vrcp.f32 %v1722_v16 }
 0x92c   : > { %v1725_v17 = vpop.xlane.xlu0 %1724 }
 0x92d   : > { %3917 = vrcp.f32 %v1725_v17 }
 0x930   : > { %v1733_v18 = vpop.permute.xlu0 %1732 }
 0x931   : > { %v1738_v19 = vsel %vm1285_vm2, %v1733_v18, 0 }
 0x932   : > { %3570 = vmatpush3.bf16.msra.mxu0 %v1738_v19 }
 0x933   : > { %v3916_v20 = vpop.eup %3915  ;;  %3581 = vmatprep.subr.bf16.mxu0 %v4451_v5 }
 0x934   : > { %v1728_v22 = vmul.f32 %v3916_v20, %v3912_v43  ;;  %v1836_v34 = vpop.permute.xlu0 %1835 }
 0x936   : > { %v1730_v23 = vpack.c.bf16 %v1728_v22, %v1728_v22  ;;  %v3808_v22 = vld [vmem:[%s5026_s27 + $0x8] sm:$0xff]  }
 0x937   : > { %v3918_v24 = vpop.eup %3917 }
 0x938   : > { %v1729_v27 = vmul.f32 %v3918_v24, %v3914_v15  ;;  %3572 = vmatmul.mubr.msk.bf16.vlgmr.msra.gmra.mrb[16].mxu0 %vm1257_vm3, %v1730_v23  ;;  %v3809_v23 = vld [vmem:[%s5026_s27 + $0x10] sm:$0xff]   ;;  %v3810_v24 = vld [vmem:[%s5026_s27 + $0x18] sm:$0xff]  }
 0x939   : > { %3583 = vmatprep.mubr.msk.bf16.mxu0 %vm4452_vm0, %v4451_v5 }
 0x93a   : > { %v1731_v30 = vpack.c.bf16 %v1729_v27, %v1729_v27  ;;  %v3811_v27 = vld [vmem:[%s5026_s27 + $0x20] sm:$0xff]  }
 0x93b   : > { %3582 = vmatpush3.bf16.xpose.msra.mxu0 %v1843_v48  ;;  %v3813_v48 = vld [vmem:[%s5026_s27 + $0x30] sm:$0xff]  }
 0x93c   : > { %3578 = vmatmul.mubr.msk.bf16.vlgmr.msra.gmra.mrb[32].mxu1 %vm1257_vm3, %v1731_v30  ;;  %3593 = vmatprep.subr.bf16.mxu0 %v4451_v5  ;;  %v3814_v30 = vld [vmem:[%s5026_s27 + $0x38] sm:$0xff]   ;;  %s2931_s27 = sshll.u32 %s4456_s3, 4  ;;  %s2932_s27 = int_to_ptr.vmem [resolvable:$true] %s2931_s27 }
 0x93d   : > { %3588 = vmatpush3.bf16.xpose.msra.mxu1 %v1893_v31  ;;  %3589 = vmatprep.mubr.msk.bf16.mxu1 %vm4452_vm0, %v4451_v5  ;;  %p4330_p0 = scmp.lt.s32.totalorder %s2932_s27, %s2932_s27 }
 0x93e   : > { %3599 = vmatprep.subr.bf16.mxu1 %v4451_v5 }
 0x942   : > { %3584 = vmatmul.mubr.msk.bf16.vlgmr.msra.gmra.mrb[20].mxu0 %vm1162_vm1, %v1836_v34 }
 0x943   : > { %3595 = vmatprep.mubr.msk.bf16.mxu0 %vm4452_vm0, %v4451_v5 }
 0x944   : > { %3590 = vmatmul.mubr.msk.bf16.vlgmr.msra.gmra.mrb[36].mxu1 %vm1162_vm1, %v1886_v35 }
 0x945   : > { %3601 = vmatprep.mubr.msk.bf16.mxu1 %vm4452_vm0, %v4451_v5 }
 0xa0b   : > { %v1774_v37 = vpop.f32.mrb[16].mxu0 }
 0xa0c   : > { %v3573_v38 = vpop.f32.mrb[17].mxu0 }
 0xa0d   : > { %v1777_v39 = vpop.f32.mrb[18].mxu0 }
 0xa0e   : > { %v3574_v40 = vpop.f32.mrb[19].mxu0 }
 0xa0f   : > { %v1822_v41 = vpop.f32.mrb[32].mxu1 }
 0xa10   : > { %v1828_v44 = vpack.c.bf16 %v1822_v41, %v1774_v37  ;;  %v3579_v45 = vpop.f32.mrb[33].mxu1 }
 0xa11   : > { %v1825_v46 = vpop.f32.mrb[34].mxu1 }
 0xa12   : > { %v3580_v53 = vpop.f32.mrb[35].mxu1 }
 0xa15   : > { %v1879_v54 = vpop.f32.mrb[20].mxu0 }
 0xa16   : > { %v1935_v55 = vmul.f32 0.17677669, %v1879_v54  ;;  %v3585_v56 = vpop.f32.mrb[21].mxu0 }
 0xa17   : > { %v1882_v57 = vpop.f32.mrb[22].mxu0  ;;  %v1929_v59 = vpop.f32.mrb[36].mxu1 }
 0xa18   : > { %v1936_v60 = vmul.f32 0.17677669, %v1929_v59  ;;  %v3586_v61 = vpop.f32.mrb[23].mxu0  ;;  %v3591_v62 = vpop.f32.mrb[37].mxu1  ;;  %v1937_v63 = vsel %vm1257_vm3, %v1935_v55, -inf }
 0xa19   : > { %1938 = vmax.xlane.f32.xlu0 %v1937_v63  ;;  %v1932_v0 = vpop.f32.mrb[38].mxu1  ;;  %v3815_v62 = vld [vmem:[%s5042_s7] ss:$16 sps:$4 sm:$0xff]   ;;  %v3818_v63 = vld [vmem:[%s5042_s7 + $0x8] ss:$16 sps:$4 sm:$0xff]  }
 0xa1a   : > { %v3592_v1 = vpop.f32.mrb[39].mxu1  ;;  %v1940_v2 = vsel %vm1257_vm3, %v1936_v60, -inf  ;;  %v3820_v0 = vld [vmem:[%s5042_s7 + $0xc] ss:$16 sps:$4 sm:$0xff]  }
 0xa1b   : > { %1941 = vmax.xlane.f32.xlu1 %v1940_v2  ;;  %v3823_v1 = vld [vmem:[%s5042_s7 + $0x24] ss:$16 sps:$4 sm:$0xff]   ;;  %v3826_v2 = vld [vmem:[%s5042_s7 + $0x2c] ss:$16 sps:$4 sm:$0xff]  }
 0xa2c   : > { %2009 = vrot.lane.b32.xlu1 %v5167_v28, %s4455_s25 }
 0xa30   : > { %1601 = vrot.lane.b32.xlu1 %v1599_v50, %s4455_s25 }
 0xa34   : > { %1830 = vrot.lane.b32.xlu1 %v1828_v44, %s4454_s19 }
 0xaa6   : > { %v1939_v3 = vpop.xlane.xlu0 %1938 }
 0xaa7   : > { %v1943_v6 = vsub.f32 %v1935_v55, %v1939_v3  ;;  %v3821_v3 = vld [vmem:[%s5042_s7 + $0x20] ss:$16 sps:$4 sm:$0xff]  }
 0xaa8   : > { %v1942_v7 = vpop.xlane.xlu1 %1941 }
 0xaa9   : > { %v1945_v8 = vmul.f32 1.442695, %v1943_v6  ;;  %v1944_v9 = vsub.f32 %v1936_v60, %v1942_v7 }
 0xaab   : > { %3919 = vpow2.f32 %v1945_v8  ;;  %v1947_v10 = vmul.f32 1.442695, %v1944_v9 }
 0xaac   : > { %v2010_v11 = vpop.permute.xlu1 %2009 }
 0xaad   : > { %3921 = vpow2.f32 %v1947_v10  ;;  %v2015_v12 = vsel %vm1285_vm2, %v2010_v11, 0 }
 0xaae   : > { %3600 = vmatpush3.bf16.msra.mxu1 %v2015_v12 }
 0xab0   : > { %v1602_v28 = vpop.permute.xlu1 %1601 }
 0xab1   : > { %1605 = vst.msk [vmem:[#allocation2] sm:$0xff] %vm1604_vm4, %v1602_v28  ;;  %v3829_v28 = vld [vmem:[%s5042_s7 + $0x44] ss:$16 sps:$4 sm:$0xff]  }
 0xab4   : > { %v1831_v42 = vpop.permute.xlu1 %1830 }
 0xab5   : > { %v3920_v49 = vpop.eup %3919  ;;  %1834 = vst.msk [vmem:[#allocation2] sm:$0xff] %vm1833_vm5, %v1831_v42  ;;  %v3832_v42 = vld [vmem:[%s5042_s7 + $0x4c] ss:$16 sps:$4 sm:$0xff]  }
 0xab6   : > { %v1949_v50 = vsel %vm1257_vm3, %v3920_v49, 0.0 }
 0xab7   : > { %v3922_v13 = vpop.eup %3921  ;;  %1950 = vadd.xlane.f32.xlu0 %v1949_v50  ;;  %v3830_v50 = vld [vmem:[%s5042_s7 + $0x48] ss:$16 sps:$4 sm:$0xff]  }
 0xab8   : > { %v1952_v14 = vsel %vm1257_vm3, %v3922_v13, 0.0 }
 0xabb   : > { %1953 = vadd.xlane.f32.xlu0 %v1952_v14  ;;  %v3838_v14 = vld [vmem:[%s5042_s7 + $0x6c] ss:$16 sps:$4 sm:$0xff]  }
 0xad1   : > { %1961 = vrot.lane.b32.xlu0 %v5148_v58, %s4455_s25 }
 0xb44   : > { %v1951_v43 = vpop.xlane.xlu0 %1950 }
 0xb45   : > { %3923 = vrcp.f32 %v1951_v43  ;;  %v3833_v43 = vld [vmem:[%s5042_s7 + $0x60] ss:$16 sps:$4 sm:$0xff]  }
 0xb48   : > { %v1954_v47 = vpop.xlane.xlu0 %1953 }
 0xb49   : > { %3925 = vrcp.f32 %v1954_v47  ;;  %v3836_v47 = vld [vmem:[%s5042_s7 + $0x68] ss:$16 sps:$4 sm:$0xff]  }
 0xb4c   : > { %v1962_v15 = vpop.permute.xlu0 %1961 }
 0xb4d   : > { %v1967_v51 = vsel %vm1285_vm2, %v1962_v15, 0  ;;  %v3841_v15 = vld [vmem:[%s5042_s7 + $0x84] ss:$16 sps:$4 sm:$0xff]  }
 0xb4e   : > { %3594 = vmatpush3.bf16.msra.mxu0 %v1967_v51  ;;  %v3844_v51 = vld [vmem:[%s5042_s7 + $0x8c] ss:$16 sps:$4 sm:$0xff]  }
 0xb4f   : > { %v3924_v16 = vpop.eup %3923  ;;  %3605 = vmatprep.subr.bf16.mxu0 %v4451_v5 }
 0xb50   : > { %v1957_v17 = vmul.f32 %v3924_v16, %v3920_v49  ;;  %v3827_v49 = vld [vmem:[%s5042_s7 + $0x40] ss:$16 sps:$4 sm:$0xff]  }
 0xb51   : > { %v3839_v16 = vld [vmem:[%s5042_s7 + $0x80] ss:$16 sps:$4 sm:$0xff]  }
 0xb52   : > { %v1959_v18 = vpack.c.bf16 %v1957_v17, %v1957_v17  ;;  %v3842_v17 = vld [vmem:[%s5042_s7 + $0x88] ss:$16 sps:$4 sm:$0xff]  }
 0xb53   : > { %v3926_v19 = vpop.eup %3925 }
 0xb54   : > { %v1958_v20 = vmul.f32 %v3926_v19, %v3922_v13  ;;  %3596 = vmatmul.mubr.msk.bf16.vlgmr.msra.gmra.mrb[24].mxu0 %vm1257_vm3, %v1959_v18  ;;  %v3835_v13 = vld [vmem:[%s5042_s7 + $0x64] ss:$16 sps:$4 sm:$0xff]   ;;  %v3850_v19 = vld [vmem:[%s5042_s7 + $0xac] ss:$16 sps:$4 sm:$0xff]  }
 0xb55   : > { %3621 = vmatprep.mubr.msk.bf16.mxu0 %vm4452_vm0, %v4451_v5  ;;  %3606 = vmatpush3.bf16.msra.mxu0 %v3807_v21  ;;  %v3847_v18 = vld [vmem:[%s5042_s7 + $0xa4] ss:$16 sps:$4 sm:$0xff]  }
 0xb56   : > { %v1960_v58 = vpack.c.bf16 %v1958_v20, %v1958_v20  ;;  %3607 = vmatprep.subr.bf16.mxu0 %v4451_v5  ;;  %v3845_v20 = vld [vmem:[%s5042_s7 + $0xa0] ss:$16 sps:$4 sm:$0xff]   ;;  %v3853_v21 = vld [vmem:[%s5042_s7 + $0xc4] ss:$16 sps:$4 sm:$0xff]  }
 0xb58   : > { %3602 = vmatmul.mubr.msk.bf16.vlgmr.msra.gmra.mrb[40].mxu1 %vm1257_vm3, %v1960_v58  ;;  %v3848_v58 = vld [vmem:[%s5042_s7 + $0xa8] ss:$16 sps:$4 sm:$0xff]  }
 0xb59   : > { %2467 = vmatprep.mubr.bf16.mxu1 %v4450_v4  ;;  %3608 = vmatpush3.bf16.msra.mxu0 %v3808_v22  ;;  %v3856_v22 = vld [vmem:[%s5042_s7 + $0xcc] ss:$16 sps:$4 sm:$0xff]  }
 0xb5a   : > { %3609 = vmatprep.subr.bf16.mxu0 %v4451_v5 }
 0xb5d   : > { %3610 = vmatpush3.bf16.msra.mxu0 %v3809_v23  ;;  %v3851_v23 = vld [vmem:[%s5042_s7 + $0xc0] ss:$16 sps:$4 sm:$0xff]  }
 0xb5e   : > { %3611 = vmatprep.subr.bf16.mxu0 %v4451_v5 }
 0xb61   : > { %3612 = vmatpush3.bf16.msra.mxu0 %v3810_v24  ;;  %v3854_v24 = vld [vmem:[%s5042_s7 + $0xc8] ss:$16 sps:$4 sm:$0xff]  }
 0xb62   : > { %3613 = vmatprep.subr.bf16.mxu0 %v4451_v5 }
 0xb65   : > { %3614 = vmatpush3.bf16.msra.mxu0 %v3811_v27  ;;  %v3859_v27 = vld [vmem:[%s5042_s7 + $0xe4] ss:$16 sps:$4 sm:$0xff]  }
 0xb66   : > { %3615 = vmatprep.subr.bf16.mxu0 %v4451_v5 }
 0xb69   : > { %3616 = vmatpush3.bf16.msra.mxu0 %v3812_v29  ;;  %v3862_v29 = vld [vmem:[%s5042_s7 + $0xec] ss:$16 sps:$4 sm:$0xff]  }
 0xb6a   : > { %3617 = vmatprep.subr.bf16.mxu0 %v4451_v5 }
 0xb6d   : > { %3618 = vmatpush3.bf16.msra.mxu0 %v3813_v48  ;;  %v3857_v48 = vld [vmem:[%s5042_s7 + $0xe0] ss:$16 sps:$4 sm:$0xff]  }
 0xb6e   : > { %3619 = vmatprep.subr.bf16.mxu0 %v4451_v5  ;;  %v3303_v5 = vld [vmem:[%s715_s23] ss:$0 sm:$0xff]  ;;  %s4323_s23 = scalar_lea.vmem %s2932_s27, 256 }
 0xb6f   : > { %p4324_p5 = scmp.ne.s32.totalorder %s2932_s27, %s4323_s23  ;;  %p4331_p8 = scmp.lt.s32.totalorder %s4323_s23, %s4323_s23 }
 0xb71   : > { %3620 = vmatpush3.bf16.msra.mxu0 %v3814_v30  ;;  %v3860_v30 = vld [vmem:[%s5042_s7 + $0xe8] ss:$16 sps:$4 sm:$0xff]   ;;  %p4325_p12 = pnand %p4324_p5, %p3707_p6  ;;  %p4332_p11 = por %p4331_p8, %p4330_p0 }
 0xb72   : > { %2478 = vmatprep.subr.bf16.mxu0 %v3820_v0  ;;  %v3869_v0 = vld [vmem:[%s5052_s15 + $0x8] sm:$0xff]  }
 0xb73   : > { %p4326_p13 = pneg %p4325_p12 }
 0xb75   : > { %p4333_p1 = pnand %p4332_p11, %p4326_p13 }
 0xc27   : > { %v2003_v31 = vpop.f32.mrb[24].mxu0 }
 0xc28   : > { %v3597_v34 = vpop.f32.mrb[25].mxu0 }
 0xc29   : > { %v2006_v35 = vpop.f32.mrb[26].mxu0  ;;  %v3864_v34 = vld [vmem:[%s5052_s15 + $0xc0] sm:$0xff]  }
 0xc2a   : > { %v3598_v37 = vpop.f32.mrb[27].mxu0 }
 0xc2b   : > { %v2051_v38 = vpop.f32.mrb[40].mxu1 }
 0xc2c   : > { %v2057_v39 = vpack.c.bf16 %v2051_v38, %v2003_v31  ;;  %v3603_v40 = vpop.f32.mrb[41].mxu1  ;;  %v3863_v31 = vld [vmem:[%s5052_s15 + $0x40] sm:$0xff]  }
 0xc2d   : > { %v2054_v41 = vpop.f32.mrb[42].mxu1 }
 0xc2e   : > { %2059 = vrot.lane.b32.xlu0 %v2057_v39, %s4453_s12  ;;  %v3604_v44 = vpop.f32.mrb[43].mxu1 }
 0xca0   : > { %v2060_v45 = vpop.permute.xlu0 %2059 }
 0xca1   : > { %2063 = vst.msk [vmem:[#allocation2] sm:$0xff] %vm2062_vm6, %v2060_v45 }
 0xca8   : > { %v2064_v46 = vld [vmem:[#allocation2] sm:$0xff] }
 0xca9   : > { %3622 = vmatmul.mubr.bf16.vlgmr.msra.gmra.mrb[28].mxu0 %v2064_v46  ;;  %v3312_v46 = vld [vmem:[%s723_s21] ss:$0 sm:$0xff] }
 0xcaa   : > { %2510 = vmatprep.mubr.bf16.mxu0 %v4450_v4  ;;  %v3817_v4 = vld [vmem:[%s5042_s7 + $0x4] ss:$16 sps:$4 sm:$0xff]   ;;  %2479 = vmatpush1.bf16.msra.mxu0 %v3818_v63 }
 0xcab   : > { %2435 = vmatprep.subr.bf16.mxu1 %v3817_v4  ;;  %2480 = vmatprep.subr.bf16.mxu0 %v3826_v2  ;;  %v3867_v4 = vld [vmem:[%s5052_s15 + $0x48] sm:$0xff]   ;;  %v3871_v2 = vld [vmem:[%s5052_s15 + $0x50] sm:$0xff]  }
 0xcac   : > { %2436 = vmatpush1.bf16.msra.mxu1 %v3815_v62  ;;  %v3868_v63 = vld [vmem:[%s5052_s15 + $0xc8] sm:$0xff]  }
 0xcad   : > { %2437 = vmatprep.subr.bf16.mxu1 %v3823_v1  ;;  %v3870_v1 = vld [vmem:[%s5052_s15 + $0x88] sm:$0xff]  }
 0xcb0   : > { %2438 = vmatpush1.bf16.msra.mxu1 %v3821_v3  ;;  %v3872_v3 = vld [vmem:[%s5052_s15 + $0xd0] sm:$0xff]  }
 0xcb1   : > { %2439 = vmatprep.subr.bf16.mxu1 %v3829_v28  ;;  %v3882_v28 = vld [vmem:[%s5052_s15 + $0xa0] sm:$0xff]  }
 0xcb4   : > { %2440 = vmatpush1.bf16.msra.mxu1 %v3827_v49  ;;  %v3884_v49 = vld [vmem:[%s5052_s15 + $0xe8] sm:$0xff]  }
 0xcb5   : > { %2441 = vmatprep.subr.bf16.mxu1 %v3835_v13  ;;  %v3886_v13 = vld [vmem:[%s5052_s15 + $0xa8] sm:$0xff]  }
 0xcb8   : > { %2442 = vmatpush1.bf16.msra.mxu1 %v3833_v43  ;;  %v3888_v43 = vld [vmem:[%s5052_s15 + $0xf0] sm:$0xff]  }
 0xcb9   : > { %2443 = vmatprep.subr.bf16.mxu1 %v3841_v15  ;;  %v3890_v15 = vld [vmem:[%s5052_s15 + $0xb0] sm:$0xff]  }
 0xcbc   : > { %2444 = vmatpush1.bf16.msra.mxu1 %v3839_v16  ;;  %v3892_v16 = vld [vmem:[%s5052_s15 + $0xf8] sm:$0xff]  }
 0xcbd   : > { %2445 = vmatprep.subr.bf16.mxu1 %v3847_v18  ;;  %v3894_v18 = vld [vmem:[%s5052_s15 + $0xb8] sm:$0xff]  }
 0xcc0   : > { %2446 = vmatpush1.bf16.msra.mxu1 %v3845_v20  ;;  %v2269_v20 = vsub.s32 3, %v5114_v32 }
 0xcc1   : > { %2447 = vmatprep.subr.bf16.mxu1 %v3853_v21 }
 0xcc4   : > { %2448 = vmatpush1.bf16.msra.mxu1 %v3851_v23 }
 0xcc5   : > { %2449 = vmatprep.subr.bf16.mxu1 %v3859_v27 }
 0xcc8   : > { %2450 = vmatpush1.bf16.msra.mxu1 %v3857_v48 }
 0xcc9   : > { %3445 = vmatprep.subr.bf16.mxu1 %v3863_v31 }
 0xd7c   : > { %v2170_v53 = vpop.f32.mrb[28].mxu0 }
 0xd7d   : > { %v2171_v54 = vadd.f32 %v3303_v5, %v2170_v53  ;;  %v3623_v55 = vpop.f32.mrb[29].mxu0 }
 0xd7e   : > { %v2173_v56 = vpop.f32.mrb[30].mxu0  ;;  %v3313_v55 = vld [vmem:[%s731_s18] ss:$0 sm:$0xff] }
 0xd7f   : > { %v2174_v57 = vadd.f32 %v3303_v5, %v2173_v56  ;;  %v3624_v59 = vpop.f32.mrb[31].mxu0  ;;  %v2177_v60 = vadd.f32 %v2171_v54, %v5093_v25  ;;  %v3824_v25 = vld [vmem:[%s5042_s7 + $0x28] ss:$16 sps:$4 sm:$0xff]  }
 0xd80   : > { %2481 = vmatpush1.bf16.msra.mxu0 %v3824_v25  ;;  %v3873_v25 = vld [vmem:[%s5052_s15 + $0x10] sm:$0xff]  }
 0xd81   : > { %2181 = vadd.xlane.f32.xlu1 %v2177_v60  ;;  %v2178_v61 = vadd.f32 %v2174_v57, %v5095_v26  ;;  %2482 = vmatprep.subr.bf16.mxu0 %v3832_v42  ;;  %v3883_v42 = vld [vmem:[%s5052_s15 + $0x68] sm:$0xff]  }
 0xd83   : > { %2183 = vadd.xlane.f32.xlu0 %v2178_v61 }
 0xd84   : > { %2483 = vmatpush1.bf16.msra.mxu0 %v3830_v50  ;;  %v3885_v50 = vld [vmem:[%s5052_s15 + $0x28] sm:$0xff]  }
 0xd85   : > { %2484 = vmatprep.subr.bf16.mxu0 %v3838_v14  ;;  %v3887_v14 = vld [vmem:[%s5052_s15 + $0x70] sm:$0xff]  }
 0xd88   : > { %2485 = vmatpush1.bf16.msra.mxu0 %v3836_v47  ;;  %v3889_v47 = vld [vmem:[%s5052_s15 + $0x30] sm:$0xff]  }
 0xd89   : > { %2486 = vmatprep.subr.bf16.mxu0 %v3844_v51  ;;  %v3891_v51 = vld [vmem:[%s5052_s15 + $0x78] sm:$0xff]  }
 0xd8c   : > { %2487 = vmatpush1.bf16.msra.mxu0 %v3842_v17  ;;  %v3893_v17 = vld [vmem:[%s5052_s15 + $0x38] sm:$0xff]  }
 0xd8d   : > { %2488 = vmatprep.subr.bf16.mxu0 %v3850_v19  ;;  %v2253_v19 = vld [vmem:[%s5049_s20] sm:$0xf] }
 0xd8e   : > { %v2266_v21 = vrot.slane %v2253_v19, %v927_v52  ;;  %v2270_v23 = vrot.slane %v2253_v19, %v2269_v20 }
 0xd90   : > { %2489 = vmatpush1.bf16.msra.mxu0 %v3848_v58  ;;  %v2258_v58 = vrot.slane %v2253_v19, %v919_v36 }
 0xd91   : > { %2490 = vmatprep.subr.bf16.mxu0 %v3856_v22  ;;  %v2262_v22 = vrot.slane %v2253_v19, %v923_v33 }
 0xd94   : > { %2491 = vmatpush1.bf16.msra.mxu0 %v3854_v24 }
 0xd95   : > { %2492 = vmatprep.subr.bf16.mxu0 %v3862_v29 }
 0xd98   : > { %2493 = vmatpush1.bf16.msra.mxu0 %v3860_v30 }
 0xd99   : > { %3467 = vmatprep.subr.bf16.mxu0 %v3864_v34 }
 0xe0e   : > { %v2182_v26 = vpop.xlane.xlu1 %2181 }
 0xe0f   : > { %v2186_v6 = vmul.f32 0.0078125, %v2182_v26  ;;  %v3874_v26 = vld [vmem:[%s5052_s15 + $0x90] sm:$0xff]  }
 0xe10   : > { %v2184_v7 = vpop.xlane.xlu0 %2183 }
 0xe11   : > { %v5315_v8 = vsub.f32 %v2177_v60, %v2186_v6  ;;  %v2187_v9 = vmul.f32 0.0078125, %v2184_v7  ;;  %v3865_v60 = vld [vmem:[%s5052_s15] sm:$0xff]   ;;  %v3875_v6 = vld [vmem:[%s5052_s15 + $0x58] sm:$0xff]  }
 0xe12   : > { %v3876_v7 = vld [vmem:[%s5052_s15 + $0xd8] sm:$0xff]  }
 0xe13   : > { %v5317_v10 = vsub.f32 %v2178_v61, %v2187_v9  ;;  %v2190_v11 = vmul.f32 %v5315_v8, %v5315_v8  ;;  %v3866_v61 = vld [vmem:[%s5052_s15 + $0x80] sm:$0xff]   ;;  %v3878_v9 = vld [vmem:[%s5052_s15 + $0x98] sm:$0xff]  }
 0xe15   : > { %2192 = vadd.xlane.f32.xlu0 %v2190_v11  ;;  %v2191_v12 = vmul.f32 %v5317_v10, %v5317_v10  ;;  %v3880_v11 = vld [vmem:[%s5052_s15 + $0xe0] sm:$0xff]  }
 0xe19   : > { %2194 = vadd.xlane.f32.xlu0 %v2191_v12  ;;  %v3881_v12 = vld [vmem:[%s5052_s15 + $0x20] sm:$0xff]  }
 0xea2   : > { %v2193_v35 = vpop.xlane.xlu0 %2192 }
 0xea3   : > { %v2196_v37 = vmul.f32 0.0078125, %v2193_v35 }
 0xea5   : > { %v2198_v38 = vadd.f32 1e-05, %v2196_v37 }
 0xea6   : > { %v2195_v39 = vpop.xlane.xlu0 %2194 }
 0xea7   : > { %3927 = vrsqrt.f32 %v2198_v38  ;;  %v2197_v40 = vmul.f32 0.0078125, %v2195_v39 }
 0xea9   : > { %v2199_v41 = vadd.f32 1e-05, %v2197_v40 }
 0xeab   : > { %3929 = vrsqrt.f32 %v2199_v41 }
 0xeb1   : > { %v3928_v44 = vpop.eup %3927 }
 0xeb2   : > { %v2202_v45 = vmul.f32 %v3928_v44, %v5315_v8  ;;  %v3877_v8 = vld [vmem:[%s5052_s15 + $0x18] sm:$0xff]  }
 0xeb4   : > { %v2210_v54 = vmul.f32 %v3312_v46, %v2202_v45 }
 0xeb5   : > { %v3930_v5 = vpop.eup %3929 }
 0xeb6   : > { %v2203_v53 = vmul.f32 %v3930_v5, %v5317_v10  ;;  %v5355_v57 = vadd.f32 %v3313_v55, %v2210_v54  ;;  %v3879_v10 = vld [vmem:[%s5052_s15 + $0x60] sm:$0xff]  }
 0xeb8   : > { %v2211_v56 = vmul.f32 %v3312_v46, %v2203_v53 }
 0xeba   : > { %v5357_v59 = vadd.f32 %v3313_v55, %v2211_v56 }
 0xebc   : > { %v2220_v62 = vpack.c.bf16 %v5357_v59, %v5355_v57 }
 0xebe   : > { %2468 = vmatmul.mubr.bf16.vlgmr.msra.gmra.mrb[44].mxu1 %v2220_v62  ;;  %2511 = vmatmul.mubr.bf16.vlgmr.msra.gmra.mrb[32].mxu0 %v2220_v62 }
 0xebf   : > { %3446 = vmatpush3.bf16.msra.mxu1 %v3865_v60  ;;  %3468 = vmatpush3.bf16.msra.mxu0 %v3866_v61 }
 0xec0   : > { %3447 = vmatprep.subr.bf16.mxu1 %v3867_v4  ;;  %3469 = vmatprep.subr.bf16.mxu0 %v3868_v63 }
 0xec3   : > { %3448 = vmatpush3.bf16.msra.mxu1 %v3869_v0  ;;  %3470 = vmatpush3.bf16.msra.mxu0 %v3870_v1  ;;  %v3346_v0 = vld [vmem:[%s766_s22] ss:$0 sm:$0xff] }
 0xec4   : > { %3449 = vmatprep.subr.bf16.mxu1 %v3871_v2  ;;  %3471 = vmatprep.subr.bf16.mxu0 %v3872_v3 }
 0xec7   : > { %3450 = vmatpush3.bf16.msra.mxu1 %v3873_v25  ;;  %3472 = vmatpush3.bf16.msra.mxu0 %v3874_v26 }
 0xec8   : > { %3451 = vmatprep.subr.bf16.mxu1 %v3875_v6  ;;  %3473 = vmatprep.subr.bf16.mxu0 %v3876_v7 }
 0xecb   : > { %3452 = vmatpush3.bf16.msra.mxu1 %v3877_v8  ;;  %3474 = vmatpush3.bf16.msra.mxu0 %v3878_v9 }
 0xecc   : > { %3453 = vmatprep.subr.bf16.mxu1 %v3879_v10  ;;  %3475 = vmatprep.subr.bf16.mxu0 %v3880_v11 }
 0xecf   : > { %3454 = vmatpush3.bf16.msra.mxu1 %v3881_v12  ;;  %3476 = vmatpush3.bf16.msra.mxu0 %v3882_v28 }
 0xed0   : > { %3455 = vmatprep.subr.bf16.mxu1 %v3883_v42  ;;  %3477 = vmatprep.subr.bf16.mxu0 %v3884_v49 }
 0xed3   : > { %3456 = vmatpush3.bf16.msra.mxu1 %v3885_v50  ;;  %3478 = vmatpush3.bf16.msra.mxu0 %v3886_v13 }
 0xed4   : > { %3457 = vmatprep.subr.bf16.mxu1 %v3887_v14  ;;  %3479 = vmatprep.subr.bf16.mxu0 %v3888_v43 }
 0xed7   : > { %3458 = vmatpush3.bf16.msra.mxu1 %v3889_v47  ;;  %3480 = vmatpush3.bf16.msra.mxu0 %v3890_v15 }
 0xed8   : > { %3459 = vmatprep.subr.bf16.mxu1 %v3891_v51  ;;  %3481 = vmatprep.subr.bf16.mxu0 %v3892_v16 }
 0xedb   : > { %3460 = vmatpush3.bf16.msra.mxu1 %v3893_v17  ;;  %3482 = vmatpush3.bf16.msra.mxu0 %v3894_v18 }
 0xf91   : > { %v2469_v24 = vpop.f32.mrb[44].mxu1  ;;  %v2512_v27 = vpop.f32.mrb[32].mxu0 }
 0xf92   : > { %v2470_v29 = vadd.f32 %v2469_v24, %v2258_v58  ;;  %v2513_v48 = vadd.f32 %v2512_v27, %v2266_v21  ;;  %v2471_v30 = vpop.f32.mrb[45].mxu1  ;;  %v2514_v31 = vpop.f32.mrb[33].mxu0  ;;  %v3380_v27 = vld [vmem:[%s782_s11] ss:$0 sm:$0xff] }
 0xf93   : > { %v2472_v34 = vadd.f32 %v2471_v30, %v2262_v22  ;;  %v2515_v35 = vadd.f32 %v2514_v31, %v2270_v23  ;;  %v2473_v37 = vpop.f32.mrb[46].mxu1  ;;  %v2516_v38 = vpop.f32.mrb[34].mxu0 }
 0xf94   : > { %v2474_v39 = vadd.f32 %v2473_v37, %v2258_v58  ;;  %v2517_v40 = vadd.f32 %v2516_v38, %v2266_v21  ;;  %v2475_v36 = vpop.f32.mrb[47].mxu1  ;;  %v2518_v41 = vpop.f32.mrb[35].mxu0  ;;  %v2521_v45 = vmax.f32 %v2470_v29, 0.0  ;;  %v2523_v32 = vmax.f32 %v2513_v48, 0.0 }
 0xf95   : > { %v2476_v44 = vadd.f32 %v2475_v36, %v2262_v22  ;;  %v2519_v52 = vadd.f32 %v2518_v41, %v2270_v23  ;;  %v2522_v5 = vmax.f32 %v2472_v34, 0.0  ;;  %v2524_v53 = vmax.f32 %v2515_v35, 0.0  ;;  %v3379_v22 = vld [vmem:[%s774_s10] ss:$0 sm:$0xff] }
 0xf96   : > { %v2525_v33 = vmax.f32 %v2474_v39, 0.0  ;;  %v2527_v46 = vmax.f32 %v2517_v40, 0.0 }
 0xf97   : > { %v2526_v54 = vmax.f32 %v2476_v44, 0.0  ;;  %v2528_v55 = vmax.f32 %v2519_v52, 0.0 }
 0xf98   : > { %v2529_v56 = vpack.c.bf16 %v2525_v33, %v2521_v45  ;;  %v2531_v60 = vpack.c.bf16 %v2527_v46, %v2523_v32 }
 0xf99   : > { %v2530_v61 = vpack.c.bf16 %v2526_v54, %v2522_v5  ;;  %v2532_v62 = vpack.c.bf16 %v2528_v55, %v2524_v53 }
 0xf9b   : > { %2828 = vmatprep.mubr.bf16.mxu1 %v2530_v61  ;;  %2869 = vmatprep.mubr.bf16.mxu0 %v2532_v62 }
 0xf9c   : > { %2829 = vmatmul.mubr.bf16.vlgmr.msra.gmra.mrb[48].mxu1 %v2529_v56  ;;  %2870 = vmatmul.mubr.bf16.vlgmr.msra.gmra.mrb[36].mxu0 %v2531_v60 }
0x106f   : > { %v3461_v4 = vpop.f32.mrb[48].mxu1  ;;  %v3483_v63 = vpop.f32.mrb[36].mxu0 }
0x1070   : > { %v3462_v1 = vpop.f32.mrb[49].mxu1  ;;  %v3484_v2 = vpop.f32.mrb[37].mxu0 }
0x1071   : > { %v3463_v3 = vadd.f32 %v3462_v1, %v3461_v4  ;;  %v3485_v25 = vadd.f32 %v3484_v2, %v3483_v63  ;;  %v3464_v26 = vpop.f32.mrb[50].mxu1  ;;  %v3486_v6 = vpop.f32.mrb[38].mxu0 }
0x1072   : > { %v3465_v7 = vpop.f32.mrb[51].mxu1  ;;  %v3487_v8 = vpop.f32.mrb[39].mxu0 }
0x1073   : > { %v2831_v9 = vadd.f32 %v3463_v3, %v3346_v0  ;;  %v3466_v10 = vadd.f32 %v3465_v7, %v3464_v26  ;;  %v3488_v11 = vadd.f32 %v3487_v8, %v3486_v6 }
0x1075   : > { %v2872_v12 = vadd.f32 %v3485_v25, %v2831_v9  ;;  %v2834_v28 = vadd.f32 %v3466_v10, %v3346_v0 }
0x1077   : > { %v2875_v42 = vadd.f32 %v3488_v11, %v2834_v28  ;;  %v2878_v49 = vadd.f32 %v2872_v12, %v5355_v57 }
0x1079   : > { %2882 = vadd.xlane.f32.xlu1 %v2878_v49  ;;  %v2879_v50 = vadd.f32 %v2875_v42, %v5357_v59 }
0x107b   : > { %2884 = vadd.xlane.f32.xlu0 %v2879_v50 }
0x1106   : > { %v2883_v13 = vpop.xlane.xlu1 %2882 }
0x1107   : > { %v2886_v14 = vmul.f32 0.0078125, %v2883_v13 }
0x1108   : > { %v2885_v43 = vpop.xlane.xlu0 %2884 }
0x1109   : > { %v2888_v47 = vsub.f32 %v2878_v49, %v2886_v14  ;;  %v2887_v15 = vmul.f32 0.0078125, %v2885_v43 }
0x110b   : > { %v2889_v51 = vsub.f32 %v2879_v50, %v2887_v15  ;;  %v2890_v16 = vmul.f32 %v2888_v47, %v2888_v47 }
0x110d   : > { %2892 = vadd.xlane.f32.xlu1 %v2890_v16  ;;  %v2891_v17 = vmul.f32 %v2889_v51, %v2889_v51 }
0x110f   : > { %2894 = vadd.xlane.f32.xlu0 %v2891_v17 }
0x119a   : > { %v2893_v18 = vpop.xlane.xlu1 %2892 }
0x119b   : > { %v2896_v19 = vmul.f32 0.0078125, %v2893_v18 }
0x119c   : > { %v2895_v20 = vpop.xlane.xlu0 %2894 }
0x119d   : > { %v2898_v57 = vadd.f32 1e-05, %v2896_v19  ;;  %v2897_v58 = vmul.f32 0.0078125, %v2895_v20 }
0x119f   : > { %3931 = vrsqrt.f32 %v2898_v57  ;;  %v2899_v59 = vadd.f32 1e-05, %v2897_v58 }
0x11a1   : > { %3933 = vrsqrt.f32 %v2899_v59 }
0x11a9   : > { %v3932_v21 = vpop.eup %3931 }
0x11aa   : > { %v2902_v23 = vmul.f32 %v3932_v21, %v2888_v47 }
0x11ab   : > { %v3934_v24 = vpop.eup %3933 }
0x11ac   : > { %v2903_v29 = vmul.f32 %v3934_v24, %v2889_v51  ;;  %v2910_v48 = vmul.f32 %v3379_v22, %v2902_v23 }
0x11ae   : > { %v2911_v30 = vmul.f32 %v3379_v22, %v2903_v29  ;;  %v2918_v31 = vadd.f32 %v3380_v27, %v2910_v48 }
0x11b0   : > { %v2919_v34 = vadd.f32 %v3380_v27, %v2911_v30  ;;  %2920 = vst [vmem:[#allocation24] sm:$0xff] %v2918_v31 }
0x11b2   : > { %2921 = vst [vmem:[#allocation24 + $0x8] sm:$0xff] %v2919_v34 }
0x11b3   : > { %4336 = shalt.err (!%p4333_p1)
}
0x11b4   : > { %s5532_s18 = sld [smem:[#allocation46_spill]] }
0x11ba   : > { %s4337_s13 = scalar_lea.hbm %s5532_s18, 256 }
0x11bb   : > { %p4338_p10 = scmp.ne.s32.totalorder %s5532_s18, %s4337_s13  ;;  %p4343_p9 = scmp.lt.u32.totalorder %s4337_s13, %s5532_s18 }
0x11bd   : > { %p4339_p3 = pnand %p4338_p10, %p3707_p6 }
0x11bf   : > { %p4340_p7 = pneg %p4339_p3 }
0x11c1   : > { %p4345_p2 = pnand %p4343_p9, %p4340_p7 }
0x11c3   : > { %4348 = shalt.err (!%p4345_p2)
}
0x11c4   : > { %s4457_s15 = smov 128   ;;  %s4458_s22 = smov 8  }
0x11c5   : > { %3660 = dma.vmem_to_hbm [thread:$0]  (%p3707_p6), %s2932_s27, 256, %s5532_s18, [#allocation5], %s4457_s15, %s4457_s15, %s4458_s22  }
0x11c6   : > { %4402 = dma.done.wait (%p3707_p6), [#allocation5], 256  }
0x11c7   : > { %4404 = vsyncadd (%p3707_p6), [#allocation5], 4294967040 }
0x11c8 PF: > { %s43_s30 = sadd.s32 1, %s4427_s30   ;;  %s5533_s11 = sld [smem:[#allocation33_spill]] }
0x11c9   : > { %p40_p4 = scmp.ge.s32.totalorder %s43_s30, 4   ;;  %s5534_s27 = sld [smem:[#allocation36_spill]] }
0x11ca   : > { %s5535_s12 = sld [smem:[#allocation35_spill]]  ;;  %s5536_s25 = smov %s4411_s26 }
0x11cb   : > { %s5538_s28 = smov %s4423_s29  ;;  %42 = sbr.rel (!%p40_p4) target bundleno = 27 (0x1b), region = 251 }
0x11ce   : > { %s5537_s26 = smov %s5533_s11 }
0x11d0   : > { %s5539_s29 = smov %s5535_s12 }
0x11d2   :  { %2947 = vsyncpa [#allocation4], 1 }
0x11d3   :  { %2949 = vsyncpa [#allocation4 + $0x1], 1 }
0x11d4   :  { %2950 = vsyncpa [#allocation7], 1 }
0x11d5   :  { %2952 = vsyncpa [#allocation7 + $0x1], 1 }
0x11d6   :  { %2953 = vsyncpa [#allocation10], 1 }
0x11d7   :  { %2955 = vsyncpa [#allocation10 + $0x1], 1 }
0x11d8   :  { %2956 = vsyncpa [#allocation13], 1 }
0x11d9   :  { %2958 = vsyncpa [#allocation13 + $0x1], 1 }
0x11da   :  { %2959 = vsyncpa [#allocation16], 1 }
0x11db   :  { %2961 = vsyncpa [#allocation16 + $0x1], 1 }
0x11dc   :  { %2962 = vsyncpa [#allocation19], 1 }
0x11dd   :  { %2964 = vsyncpa [#allocation19 + $0x1], 1 }
0x11de   :  { %2965 = vsyncpa [#allocation22], 1 }
0x11df   :  { %2967 = vsyncpa [#allocation22 + $0x1], 1 }
0x11e0   :  { %2968 = vsyncpa [#allocation5], 1 }
0x11e1   :  { %2970 = vsyncpa [#allocation5 + $0x1], 1 }

</bundles_post_ra>
